<compile_context>
chip_gen: v5e
topology: v5e:2x2
jax: 0.10.0
libtpu: 0.0.40
codegen_flags: <defaults>
</compile_context>

<pallas_src>
import math

import jax
import jax.numpy as jnp
from jax import lax
from jax.experimental import pallas as pl
from jax.experimental.pallas import tpu as pltpu


def _round_up(n, m):
    return (n + m - 1) // m * m


# -----------------------------------------------------------------------------
# Fused kernel: conv1 + ReLU + maxpool + fc1 + ReLU + fc2 + log_softmax
# -----------------------------------------------------------------------------
def mynet_fused_kernel(x_ref, wb_ref, cb_ref, w1_ref, b1_ref, w2_ref, b2_ref,
                       out_ref):
    # x_ref  : (26, Bt, 84) bf16  im2col rows; leading index = eo*13 + hp
    #          (eo = conv-output-row parity, hp = pooled row); each row is the
    #          3 consecutive 28-px input rows concatenated along lanes.
    # wb_ref : (84, 512) bf16  conv weights; lane = (ow%2)*256 + (ow//2)*16 + c
    # cb_ref : (1, 256)  f32   conv bias on pooled lanes (wp*16+c), zero pad
    # w1_ref : (13, 256, 128) bf16  fc1 weights per pooled row (K compacted)
    # b1_ref : (1, 128)  f32   fc1 bias (padded 120 -> 128 with zeros)
    # w2_ref : (128, 10) bf16  fc2 weights (rows padded 120 -> 128 with zeros)
    # b2_ref : (1, 10)   f32   fc2 bias
    # out_ref: (Bt, 10)  f32   log-probabilities
    Bt = out_ref.shape[0]
    R = 13 * Bt

    # --- conv1: ONE MXU matmul over all 26 output rows of the batch tile -----
    x2 = x_ref[...].reshape(26 * Bt, 84)
    conv = jnp.dot(x2, wb_ref[...], preferred_element_type=jnp.float32)  # (26*Bt, 512)

    # --- MaxPool2d(2, 2) ------------------------------------------------------
    # H-pool: max of the even-oh / odd-oh halves (contiguous, tile-aligned rows).
    p1 = jnp.maximum(conv[:R, :], conv[R:, :])            # (13*Bt, 512)
    # W-pool: max of the two vreg-aligned 256-lane parity halves.
    p2 = jnp.maximum(p1[:, :256], p1[:, 256:])            # (13*Bt, 256)
    # Bias + ReLU after the max (both commute with max since they are monotone).
    pooled = jnp.maximum(p2 + cb_ref[...], 0.0)
    pooled = pooled.astype(jnp.bfloat16)

    # --- fc1 + ReLU: 13 MXU matmuls, contiguous sublane-aligned slices -------
    h = jnp.dot(pooled[0:Bt, :], w1_ref[0], preferred_element_type=jnp.float32)
    for hp in range(1, 13):
        h = h + jnp.dot(pooled[hp * Bt:(hp + 1) * Bt, :], w1_ref[hp],
                        preferred_element_type=jnp.float32)
    h = jnp.maximum(h + b1_ref[...], 0.0)                 # (Bt, 128)

    # --- fc2 + log_softmax ----------------------------------------------------
    logits = jnp.dot(h.astype(jnp.bfloat16), w2_ref[...],
                     preferred_element_type=jnp.float32) + b2_ref[...]
    m = jnp.max(logits, axis=-1, keepdims=True)
    s = logits - m
    lse = jnp.log(jnp.sum(jnp.exp(s), axis=-1, keepdims=True))
    out_ref[...] = s - lse


# -----------------------------------------------------------------------------
# One-time parameter preparation (hoisted out of the per-call forward)
# -----------------------------------------------------------------------------
def prepare_params(conv_w, conv_b, fc1_w, fc1_b, fc2_w, fc2_b):
    C, OW, K, WIN, HP = 16, 26, 3, 28, 13

    # Conv weights folded into a single (84, 512) im2col matrix.
    #   row index : kh*28 + wi   (3 input rows of 28 px concatenated)
    #   lane index: (ow%2)*256 + (ow//2)*16 + c  (even/odd ow parity split, so
    #   the W-pool is a vreg-aligned 256-lane max and pooled lane = wp*16 + c)
    w = conv_w.astype(jnp.float32).reshape(C, K, K)                  # (c, kh, kw)
    sel = (jnp.arange(WIN)[None, :, None]
           == (jnp.arange(OW)[None, None, :] + jnp.arange(K)[:, None, None])
           ).astype(jnp.float32)                                      # (kw, wi, ow)
    band = jnp.einsum("kwo,chk->hwoc", sel, w).reshape(K * WIN, OW * C)  # (84, 416)
    ow_i = jnp.arange(OW)
    cols = ((ow_i % 2) * 256 + (ow_i // 2) * 16)[:, None] + jnp.arange(C)[None, :]
    wband = jnp.zeros((K * WIN, 512), jnp.float32).at[:, cols.reshape(-1)].set(band)

    # Conv bias on pooled lanes (wp*16 + c); zero on the 48 padded lanes.
    cb = jnp.zeros((1, 256), jnp.float32).at[0, :HP * C].set(
        jnp.tile(conv_b.astype(jnp.float32), HP))

    # fc1: torch flatten order is (c, hp, wp).  Per pooled row hp the kernel
    # contracts K=256 (lane wp*16+c, 48 zero pad rows) against N=128 (120+8 pad).
    w1 = fc1_w.astype(jnp.float32).reshape(120, C, HP, HP)           # (n, c, hp, wp)
    w1 = w1.transpose(2, 3, 1, 0).reshape(HP, HP * C, 120)           # (hp, wp*16+c, n)
    w1 = jnp.pad(w1, ((0, 0), (0, 256 - HP * C), (0, 8)))            # (13, 256, 128)
    b1 = jnp.pad(fc1_b.astype(jnp.float32), (0, 8)).reshape(1, 128)

    # fc2: (10, 120) -> (128, 10); the 8 padded rows multiply zero h-columns.
    w2 = jnp.pad(fc2_w.astype(jnp.float32).T, ((0, 8), (0, 0)))      # (128, 10)
    b2 = fc2_b.astype(jnp.float32).reshape(1, 10)

    return (wband.astype(jnp.bfloat16), cb, w1.astype(jnp.bfloat16), b1,
            w2.astype(jnp.bfloat16), b2)


# -----------------------------------------------------------------------------
# Forward wrapper
# -----------------------------------------------------------------------------
@jax.jit
def mynet_forward(x, wband, cb, w1e, b1, w2, b2):
    """x: (B, 1, 28, 28) NCHW; remaining args from prepare_params()."""
    B = x.shape[0]
    # Batch tile: multiple of 16 (bf16 sublane packing), capped at 128 so the
    # f32 conv/pool temporaries (~17 MB at Bt=128) fit v7x's 64 MiB VMEM; use
    # at least two grid steps when the batch allows it (v7x has 2 TensorCores).
    if B <= 16:
        Bt = 16
    else:
        Bt = min(128, _round_up((B + 1) // 2, 16))
    Bp = _round_up(B, Bt)

    xs = x.reshape(B, 28, 28).astype(jnp.float32)
    xs = jnp.pad(xs, ((0, Bp - B), (0, 0), (0, 0)))

    # Row-im2col: for parity eo and pooled row hp, the matmul row of image b is
    # input rows (2*hp+eo, 2*hp+eo+1, 2*hp+eo+2) concatenated (84 px).
    def windows(start):                                              # (13, Bp, 84)
        return jnp.concatenate(
            [xs[:, start + 0:start + 25:2, :],
             xs[:, start + 1:start + 26:2, :],
             xs[:, start + 2:start + 27:2, :]], axis=-1).transpose(1, 0, 2)

    x_all = jnp.concatenate([windows(0), windows(1)], axis=0)        # (26, Bp, 84)
    x_all = x_all.astype(jnp.bfloat16)

    out = pl.pallas_call(
        mynet_fused_kernel,
        out_shape=jax.ShapeDtypeStruct((Bp, 10), jnp.float32),
        grid=(Bp // Bt,),
        in_specs=[
            pl.BlockSpec((26, Bt, 84), lambda i: (0, i, 0)),
            pl.BlockSpec((84, 512), lambda i: (0, 0)),
            pl.BlockSpec((1, 256), lambda i: (0, 0)),
            pl.BlockSpec((13, 256, 128), lambda i: (0, 0, 0)),
            pl.BlockSpec((1, 128), lambda i: (0, 0)),
            pl.BlockSpec((128, 10), lambda i: (0, 0)),
            pl.BlockSpec((1, 10), lambda i: (0, 0)),
        ],
        out_specs=pl.BlockSpec((Bt, 10), lambda i: (i, 0)),
        compiler_params=pltpu.CompilerParams(
            dimension_semantics=("parallel",),
            vmem_limit_bytes=40 * 1024 * 1024,
        ),
    )(x_all, wband, cb, w1e, b1, w2, b2)
    return out[:B]


# -----------------------------------------------------------------------------
# Pure-JAX reference (mirrors the PyTorch forward exactly, all f32)
# -----------------------------------------------------------------------------
def mynet_reference(x, conv_w, conv_b, fc1_w, fc1_b, fc2_w, fc2_b):
    conv = lax.conv_general_dilated(
        x.astype(jnp.float32), conv_w, window_strides=(1, 1), padding="VALID",
        dimension_numbers=("NCHW", "OIHW", "NCHW"),
    ) + conv_b.reshape(1, 16, 1, 1)
    r = jnp.maximum(conv, 0.0)
    p = lax.reduce_window(r, -jnp.inf, lax.max, (1, 1, 2, 2), (1, 1, 2, 2), "VALID")
    flat = p.reshape(x.shape[0], -1)                      # (B, 16*13*13), C-major
    h = jnp.maximum(flat @ fc1_w.T + fc1_b, 0.0)
    logits = h @ fc2_w.T + fc2_b
    return logits - jax.scipy.special.logsumexp(logits, axis=1, keepdims=True)


if __name__ == "__main__":
    # 28x28 spatial size is forced by fc1's 16*13*13 input; batch kept small.
    B = 2
    key = jax.random.PRNGKey(0)
    ks = jax.random.split(key, 7)

    x = jax.random.normal(ks[0], (B, 1, 28, 28), jnp.float32)

    bnd_c = 1.0 / math.sqrt(9.0)
    bnd_1 = 1.0 / math.sqrt(16 * 13 * 13)
    bnd_2 = 1.0 / math.sqrt(120.0)
    conv_w = jax.random.uniform(ks[1], (16, 1, 3, 3), jnp.float32, -bnd_c, bnd_c)
    conv_b = jax.random.uniform(ks[2], (16,), jnp.float32, -bnd_c, bnd_c)
    fc1_w = jax.random.uniform(ks[3], (120, 16 * 13 * 13), jnp.float32, -bnd_1, bnd_1)
    fc1_b = jax.random.uniform(ks[4], (120,), jnp.float32, -bnd_1, bnd_1)
    fc2_w = jax.random.uniform(ks[5], (10, 120), jnp.float32, -bnd_2, bnd_2)
    fc2_b = jax.random.uniform(ks[6], (10,), jnp.float32, -bnd_2, bnd_2)

    # One-time weight prep (hoisted out of the per-call forward).
    prepped = prepare_params(conv_w, conv_b, fc1_w, fc1_b, fc2_w, fc2_b)
    prepped = jax.block_until_ready(prepped)

    out = mynet_forward(x, *prepped)
    out = jax.block_until_ready(out)

    ref = mynet_reference(x, conv_w, conv_b, fc1_w, fc1_b, fc2_w, fc2_b)
    # bf16 MXU operands -> tolerance loosened (classification-irrelevant).
    if not bool(jnp.allclose(out, ref, atol=3e-2, rtol=3e-2)):
        raise SystemExit(f"mismatch vs reference: max abs err = "
                         f"{float(jnp.max(jnp.abs(out - ref)))}")

    print("KERNEL_OK")
</pallas_src>

<mosaic_0001>
module attributes {stable_mosaic.version = 11 : i64} {
  func.func @mynet_fused_kernel(%arg0: i32, %arg1: memref<26x16x84xbf16, #tpu.memory_space<vmem>>, %arg2: memref<84x512xbf16, #tpu.memory_space<vmem>>, %arg3: memref<1x256xf32, #tpu.memory_space<vmem>>, %arg4: memref<13x256x128xbf16, #tpu.memory_space<vmem>>, %arg5: memref<1x128xf32, #tpu.memory_space<vmem>>, %arg6: memref<128x10xbf16, #tpu.memory_space<vmem>>, %arg7: memref<1x10xf32, #tpu.memory_space<vmem>>, %arg8: memref<16x10xf32, #tpu.memory_space<vmem>>) attributes {dimension_semantics = [#tpu.dimension_semantics<parallel>], iteration_bounds = array<i64: 1>, scalar_prefetch = 0 : i64, scratch_operands = 0 : i64, tpu.core_type = #tpu.core_type<tc>, window_params = [{transform_indices = @transform_0, window_bounds = array<i64: 26, 16, 84>}, {pipeline_mode = #tpu.pipeline_mode<synchronous>, transform_indices = @transform_1, window_bounds = array<i64: 84, 512>}, {pipeline_mode = #tpu.pipeline_mode<synchronous>, transform_indices = @transform_2, window_bounds = array<i64: 1, 256>}, {pipeline_mode = #tpu.pipeline_mode<synchronous>, transform_indices = @transform_3, window_bounds = array<i64: 13, 256, 128>}, {pipeline_mode = #tpu.pipeline_mode<synchronous>, transform_indices = @transform_4, window_bounds = array<i64: 1, 128>}, {pipeline_mode = #tpu.pipeline_mode<synchronous>, transform_indices = @transform_5, window_bounds = array<i64: 128, 10>}, {pipeline_mode = #tpu.pipeline_mode<synchronous>, transform_indices = @transform_6, window_bounds = array<i64: 1, 10>}, {transform_indices = @transform_7, window_bounds = array<i64: 16, 10>}]} {
    %c0 = arith.constant 0 : index
    %c0_0 = arith.constant 0 : index
    %c0_1 = arith.constant 0 : index
    %0 = vector.load %arg1[%c0, %c0_0, %c0_1] : memref<26x16x84xbf16, #tpu.memory_space<vmem>>, vector<26x16x84xbf16>
    %1 = vector.shape_cast %0 : vector<26x16x84xbf16> to vector<416x84xbf16>
    %c0_2 = arith.constant 0 : index
    %c0_3 = arith.constant 0 : index
    %2 = vector.load %arg2[%c0_2, %c0_3] : memref<84x512xbf16, #tpu.memory_space<vmem>>, vector<84x512xbf16>
    %cst = arith.constant dense<0.000000e+00> : vector<416x512xf32>
    %3 = tpu.matmul %1, %2, %cst {dimension_numbers = #tpu.dot_dimension_numbers<[1], [0], [0], [1], [0, 0, 1, 1], [], []>} : vector<416x84xbf16>, vector<84x512xbf16>, vector<416x512xf32> -> vector<416x512xf32>
    %4 = vector.extract_strided_slice %3 {offsets = [0, 0], sizes = [208, 512], strides = [1, 1]} : vector<416x512xf32> to vector<208x512xf32>
    %5 = vector.extract_strided_slice %3 {offsets = [208, 0], sizes = [208, 512], strides = [1, 1]} : vector<416x512xf32> to vector<208x512xf32>
    %6 = arith.maximumf %4, %5 : vector<208x512xf32>
    %7 = vector.extract_strided_slice %6 {offsets = [0, 0], sizes = [208, 256], strides = [1, 1]} : vector<208x512xf32> to vector<208x256xf32>
    %8 = vector.extract_strided_slice %6 {offsets = [0, 256], sizes = [208, 256], strides = [1, 1]} : vector<208x512xf32> to vector<208x256xf32>
    %9 = arith.maximumf %7, %8 : vector<208x256xf32>
    %c0_4 = arith.constant 0 : index
    %c0_5 = arith.constant 0 : index
    %10 = vector.load %arg3[%c0_4, %c0_5] : memref<1x256xf32, #tpu.memory_space<vmem>>, vector<1x256xf32>
    %11 = vector.broadcast %10 : vector<1x256xf32> to vector<208x256xf32>
    %12 = arith.addf %9, %11 : vector<208x256xf32>
    %cst_6 = arith.constant 0.000000e+00 : f32
    %13 = vector.broadcast %cst_6 : f32 to vector<208x256xf32>
    %14 = arith.maximumf %12, %13 : vector<208x256xf32>
    %15 = arith.truncf %14 : vector<208x256xf32> to vector<208x256xbf16>
    %16 = vector.extract_strided_slice %15 {offsets = [0, 0], sizes = [16, 256], strides = [1, 1]} : vector<208x256xbf16> to vector<16x256xbf16>
    %c0_7 = arith.constant 0 : index
    %c0_8 = arith.constant 0 : index
    %c0_9 = arith.constant 0 : index
    %17 = vector.load %arg4[%c0_7, %c0_8, %c0_9] : memref<13x256x128xbf16, #tpu.memory_space<vmem>>, vector<1x256x128xbf16>
    %18 = vector.shape_cast %17 : vector<1x256x128xbf16> to vector<256x128xbf16>
    %cst_10 = arith.constant dense<0.000000e+00> : vector<16x128xf32>
    %19 = tpu.matmul %16, %18, %cst_10 {dimension_numbers = #tpu.dot_dimension_numbers<[1], [0], [0], [1], [0, 0, 1, 1], [], []>} : vector<16x256xbf16>, vector<256x128xbf16>, vector<16x128xf32> -> vector<16x128xf32>
    %20 = vector.extract_strided_slice %15 {offsets = [16, 0], sizes = [16, 256], strides = [1, 1]} : vector<208x256xbf16> to vector<16x256xbf16>
    %c1 = arith.constant 1 : index
    %c0_11 = arith.constant 0 : index
    %c0_12 = arith.constant 0 : index
    %21 = vector.load %arg4[%c1, %c0_11, %c0_12] : memref<13x256x128xbf16, #tpu.memory_space<vmem>>, vector<1x256x128xbf16>
    %22 = vector.shape_cast %21 : vector<1x256x128xbf16> to vector<256x128xbf16>
    %cst_13 = arith.constant dense<0.000000e+00> : vector<16x128xf32>
    %23 = tpu.matmul %20, %22, %cst_13 {dimension_numbers = #tpu.dot_dimension_numbers<[1], [0], [0], [1], [0, 0, 1, 1], [], []>} : vector<16x256xbf16>, vector<256x128xbf16>, vector<16x128xf32> -> vector<16x128xf32>
    %24 = arith.addf %19, %23 : vector<16x128xf32>
    %25 = vector.extract_strided_slice %15 {offsets = [32, 0], sizes = [16, 256], strides = [1, 1]} : vector<208x256xbf16> to vector<16x256xbf16>
    %c2 = arith.constant 2 : index
    %c0_14 = arith.constant 0 : index
    %c0_15 = arith.constant 0 : index
    %26 = vector.load %arg4[%c2, %c0_14, %c0_15] : memref<13x256x128xbf16, #tpu.memory_space<vmem>>, vector<1x256x128xbf16>
    %27 = vector.shape_cast %26 : vector<1x256x128xbf16> to vector<256x128xbf16>
    %cst_16 = arith.constant dense<0.000000e+00> : vector<16x128xf32>
    %28 = tpu.matmul %25, %27, %cst_16 {dimension_numbers = #tpu.dot_dimension_numbers<[1], [0], [0], [1], [0, 0, 1, 1], [], []>} : vector<16x256xbf16>, vector<256x128xbf16>, vector<16x128xf32> -> vector<16x128xf32>
    %29 = arith.addf %24, %28 : vector<16x128xf32>
    %30 = vector.extract_strided_slice %15 {offsets = [48, 0], sizes = [16, 256], strides = [1, 1]} : vector<208x256xbf16> to vector<16x256xbf16>
    %c3 = arith.constant 3 : index
    %c0_17 = arith.constant 0 : index
    %c0_18 = arith.constant 0 : index
    %31 = vector.load %arg4[%c3, %c0_17, %c0_18] : memref<13x256x128xbf16, #tpu.memory_space<vmem>>, vector<1x256x128xbf16>
    %32 = vector.shape_cast %31 : vector<1x256x128xbf16> to vector<256x128xbf16>
    %cst_19 = arith.constant dense<0.000000e+00> : vector<16x128xf32>
    %33 = tpu.matmul %30, %32, %cst_19 {dimension_numbers = #tpu.dot_dimension_numbers<[1], [0], [0], [1], [0, 0, 1, 1], [], []>} : vector<16x256xbf16>, vector<256x128xbf16>, vector<16x128xf32> -> vector<16x128xf32>
    %34 = arith.addf %29, %33 : vector<16x128xf32>
    %35 = vector.extract_strided_slice %15 {offsets = [64, 0], sizes = [16, 256], strides = [1, 1]} : vector<208x256xbf16> to vector<16x256xbf16>
    %c4 = arith.constant 4 : index
    %c0_20 = arith.constant 0 : index
    %c0_21 = arith.constant 0 : index
    %36 = vector.load %arg4[%c4, %c0_20, %c0_21] : memref<13x256x128xbf16, #tpu.memory_space<vmem>>, vector<1x256x128xbf16>
    %37 = vector.shape_cast %36 : vector<1x256x128xbf16> to vector<256x128xbf16>
    %cst_22 = arith.constant dense<0.000000e+00> : vector<16x128xf32>
    %38 = tpu.matmul %35, %37, %cst_22 {dimension_numbers = #tpu.dot_dimension_numbers<[1], [0], [0], [1], [0, 0, 1, 1], [], []>} : vector<16x256xbf16>, vector<256x128xbf16>, vector<16x128xf32> -> vector<16x128xf32>
    %39 = arith.addf %34, %38 : vector<16x128xf32>
    %40 = vector.extract_strided_slice %15 {offsets = [80, 0], sizes = [16, 256], strides = [1, 1]} : vector<208x256xbf16> to vector<16x256xbf16>
    %c5 = arith.constant 5 : index
    %c0_23 = arith.constant 0 : index
    %c0_24 = arith.constant 0 : index
    %41 = vector.load %arg4[%c5, %c0_23, %c0_24] : memref<13x256x128xbf16, #tpu.memory_space<vmem>>, vector<1x256x128xbf16>
    %42 = vector.shape_cast %41 : vector<1x256x128xbf16> to vector<256x128xbf16>
    %cst_25 = arith.constant dense<0.000000e+00> : vector<16x128xf32>
    %43 = tpu.matmul %40, %42, %cst_25 {dimension_numbers = #tpu.dot_dimension_numbers<[1], [0], [0], [1], [0, 0, 1, 1], [], []>} : vector<16x256xbf16>, vector<256x128xbf16>, vector<16x128xf32> -> vector<16x128xf32>
    %44 = arith.addf %39, %43 : vector<16x128xf32>
    %45 = vector.extract_strided_slice %15 {offsets = [96, 0], sizes = [16, 256], strides = [1, 1]} : vector<208x256xbf16> to vector<16x256xbf16>
    %c6 = arith.constant 6 : index
    %c0_26 = arith.constant 0 : index
    %c0_27 = arith.constant 0 : index
    %46 = vector.load %arg4[%c6, %c0_26, %c0_27] : memref<13x256x128xbf16, #tpu.memory_space<vmem>>, vector<1x256x128xbf16>
    %47 = vector.shape_cast %46 : vector<1x256x128xbf16> to vector<256x128xbf16>
    %cst_28 = arith.constant dense<0.000000e+00> : vector<16x128xf32>
    %48 = tpu.matmul %45, %47, %cst_28 {dimension_numbers = #tpu.dot_dimension_numbers<[1], [0], [0], [1], [0, 0, 1, 1], [], []>} : vector<16x256xbf16>, vector<256x128xbf16>, vector<16x128xf32> -> vector<16x128xf32>
    %49 = arith.addf %44, %48 : vector<16x128xf32>
    %50 = vector.extract_strided_slice %15 {offsets = [112, 0], sizes = [16, 256], strides = [1, 1]} : vector<208x256xbf16> to vector<16x256xbf16>
    %c7 = arith.constant 7 : index
    %c0_29 = arith.constant 0 : index
    %c0_30 = arith.constant 0 : index
    %51 = vector.load %arg4[%c7, %c0_29, %c0_30] : memref<13x256x128xbf16, #tpu.memory_space<vmem>>, vector<1x256x128xbf16>
    %52 = vector.shape_cast %51 : vector<1x256x128xbf16> to vector<256x128xbf16>
    %cst_31 = arith.constant dense<0.000000e+00> : vector<16x128xf32>
    %53 = tpu.matmul %50, %52, %cst_31 {dimension_numbers = #tpu.dot_dimension_numbers<[1], [0], [0], [1], [0, 0, 1, 1], [], []>} : vector<16x256xbf16>, vector<256x128xbf16>, vector<16x128xf32> -> vector<16x128xf32>
    %54 = arith.addf %49, %53 : vector<16x128xf32>
    %55 = vector.extract_strided_slice %15 {offsets = [128, 0], sizes = [16, 256], strides = [1, 1]} : vector<208x256xbf16> to vector<16x256xbf16>
    %c8 = arith.constant 8 : index
    %c0_32 = arith.constant 0 : index
    %c0_33 = arith.constant 0 : index
    %56 = vector.load %arg4[%c8, %c0_32, %c0_33] : memref<13x256x128xbf16, #tpu.memory_space<vmem>>, vector<1x256x128xbf16>
    %57 = vector.shape_cast %56 : vector<1x256x128xbf16> to vector<256x128xbf16>
    %cst_34 = arith.constant dense<0.000000e+00> : vector<16x128xf32>
    %58 = tpu.matmul %55, %57, %cst_34 {dimension_numbers = #tpu.dot_dimension_numbers<[1], [0], [0], [1], [0, 0, 1, 1], [], []>} : vector<16x256xbf16>, vector<256x128xbf16>, vector<16x128xf32> -> vector<16x128xf32>
    %59 = arith.addf %54, %58 : vector<16x128xf32>
    %60 = vector.extract_strided_slice %15 {offsets = [144, 0], sizes = [16, 256], strides = [1, 1]} : vector<208x256xbf16> to vector<16x256xbf16>
    %c9 = arith.constant 9 : index
    %c0_35 = arith.constant 0 : index
    %c0_36 = arith.constant 0 : index
    %61 = vector.load %arg4[%c9, %c0_35, %c0_36] : memref<13x256x128xbf16, #tpu.memory_space<vmem>>, vector<1x256x128xbf16>
    %62 = vector.shape_cast %61 : vector<1x256x128xbf16> to vector<256x128xbf16>
    %cst_37 = arith.constant dense<0.000000e+00> : vector<16x128xf32>
    %63 = tpu.matmul %60, %62, %cst_37 {dimension_numbers = #tpu.dot_dimension_numbers<[1], [0], [0], [1], [0, 0, 1, 1], [], []>} : vector<16x256xbf16>, vector<256x128xbf16>, vector<16x128xf32> -> vector<16x128xf32>
    %64 = arith.addf %59, %63 : vector<16x128xf32>
    %65 = vector.extract_strided_slice %15 {offsets = [160, 0], sizes = [16, 256], strides = [1, 1]} : vector<208x256xbf16> to vector<16x256xbf16>
    %c10 = arith.constant 10 : index
    %c0_38 = arith.constant 0 : index
    %c0_39 = arith.constant 0 : index
    %66 = vector.load %arg4[%c10, %c0_38, %c0_39] : memref<13x256x128xbf16, #tpu.memory_space<vmem>>, vector<1x256x128xbf16>
    %67 = vector.shape_cast %66 : vector<1x256x128xbf16> to vector<256x128xbf16>
    %cst_40 = arith.constant dense<0.000000e+00> : vector<16x128xf32>
    %68 = tpu.matmul %65, %67, %cst_40 {dimension_numbers = #tpu.dot_dimension_numbers<[1], [0], [0], [1], [0, 0, 1, 1], [], []>} : vector<16x256xbf16>, vector<256x128xbf16>, vector<16x128xf32> -> vector<16x128xf32>
    %69 = arith.addf %64, %68 : vector<16x128xf32>
    %70 = vector.extract_strided_slice %15 {offsets = [176, 0], sizes = [16, 256], strides = [1, 1]} : vector<208x256xbf16> to vector<16x256xbf16>
    %c11 = arith.constant 11 : index
    %c0_41 = arith.constant 0 : index
    %c0_42 = arith.constant 0 : index
    %71 = vector.load %arg4[%c11, %c0_41, %c0_42] : memref<13x256x128xbf16, #tpu.memory_space<vmem>>, vector<1x256x128xbf16>
    %72 = vector.shape_cast %71 : vector<1x256x128xbf16> to vector<256x128xbf16>
    %cst_43 = arith.constant dense<0.000000e+00> : vector<16x128xf32>
    %73 = tpu.matmul %70, %72, %cst_43 {dimension_numbers = #tpu.dot_dimension_numbers<[1], [0], [0], [1], [0, 0, 1, 1], [], []>} : vector<16x256xbf16>, vector<256x128xbf16>, vector<16x128xf32> -> vector<16x128xf32>
    %74 = arith.addf %69, %73 : vector<16x128xf32>
    %75 = vector.extract_strided_slice %15 {offsets = [192, 0], sizes = [16, 256], strides = [1, 1]} : vector<208x256xbf16> to vector<16x256xbf16>
    %c12 = arith.constant 12 : index
    %c0_44 = arith.constant 0 : index
    %c0_45 = arith.constant 0 : index
    %76 = vector.load %arg4[%c12, %c0_44, %c0_45] : memref<13x256x128xbf16, #tpu.memory_space<vmem>>, vector<1x256x128xbf16>
    %77 = vector.shape_cast %76 : vector<1x256x128xbf16> to vector<256x128xbf16>
    %cst_46 = arith.constant dense<0.000000e+00> : vector<16x128xf32>
    %78 = tpu.matmul %75, %77, %cst_46 {dimension_numbers = #tpu.dot_dimension_numbers<[1], [0], [0], [1], [0, 0, 1, 1], [], []>} : vector<16x256xbf16>, vector<256x128xbf16>, vector<16x128xf32> -> vector<16x128xf32>
    %79 = arith.addf %74, %78 : vector<16x128xf32>
    %c0_47 = arith.constant 0 : index
    %c0_48 = arith.constant 0 : index
    %80 = vector.load %arg5[%c0_47, %c0_48] : memref<1x128xf32, #tpu.memory_space<vmem>>, vector<1x128xf32>
    %81 = vector.broadcast %80 : vector<1x128xf32> to vector<16x128xf32>
    %82 = arith.addf %79, %81 : vector<16x128xf32>
    %cst_49 = arith.constant 0.000000e+00 : f32
    %83 = vector.broadcast %cst_49 : f32 to vector<16x128xf32>
    %84 = arith.maximumf %82, %83 : vector<16x128xf32>
    %85 = arith.truncf %84 : vector<16x128xf32> to vector<16x128xbf16>
    %c0_50 = arith.constant 0 : index
    %c0_51 = arith.constant 0 : index
    %86 = vector.load %arg6[%c0_50, %c0_51] : memref<128x10xbf16, #tpu.memory_space<vmem>>, vector<128x10xbf16>
    %cst_52 = arith.constant dense<0.000000e+00> : vector<16x10xf32>
    %87 = tpu.matmul %85, %86, %cst_52 {dimension_numbers = #tpu.dot_dimension_numbers<[1], [0], [0], [1], [0, 0, 1, 1], [], []>} : vector<16x128xbf16>, vector<128x10xbf16>, vector<16x10xf32> -> vector<16x10xf32>
    %c0_53 = arith.constant 0 : index
    %c0_54 = arith.constant 0 : index
    %88 = vector.load %arg7[%c0_53, %c0_54] : memref<1x10xf32, #tpu.memory_space<vmem>>, vector<1x10xf32>
    %89 = vector.broadcast %88 : vector<1x10xf32> to vector<16x10xf32>
    %90 = arith.addf %87, %89 : vector<16x10xf32>
    %cst_55 = arith.constant dense<0xFF800000> : vector<16xf32>
    %91 = vector.multi_reduction <maximumf>, %90, %cst_55 [1] : vector<16x10xf32> to vector<16xf32>
    %92 = vector.shape_cast %91 : vector<16xf32> to vector<16x1xf32>
    %93 = vector.broadcast %92 : vector<16x1xf32> to vector<16x10xf32>
    %94 = arith.subf %90, %93 : vector<16x10xf32>
    %95 = math.exp %94 : vector<16x10xf32>
    %cst_56 = arith.constant dense<0.000000e+00> : vector<16xf32>
    %96 = vector.multi_reduction <add>, %95, %cst_56 [1] : vector<16x10xf32> to vector<16xf32>
    %97 = vector.shape_cast %96 : vector<16xf32> to vector<16x1xf32>
    %98 = math.log %97 : vector<16x1xf32>
    %99 = vector.broadcast %98 : vector<16x1xf32> to vector<16x10xf32>
    %100 = arith.subf %94, %99 : vector<16x10xf32>
    %c0_57 = arith.constant 0 : index
    %c0_58 = arith.constant 0 : index
    %101 = vector.load %arg8[%c0_57, %c0_58] : memref<16x10xf32, #tpu.memory_space<vmem>>, vector<16x10xf32>
    tpu.vector_store %arg8[%c0_57, %c0_58], %100 {strides = array<i32>} : memref<16x10xf32, #tpu.memory_space<vmem>>, vector<16x10xf32>,
    return
  }
  func.func @transform_0(%arg0: i32) -> (i32, i32, i32) {
    %c0_i32 = arith.constant 0 : i32
    %c0_i32_0 = arith.constant 0 : i32
    %c0_i32_1 = arith.constant 0 : i32
    return %c0_i32, %arg0, %c0_i32_0 : i32, i32, i32
  }
  func.func @transform_1(%arg0: i32) -> (i32, i32) {
    %c0_i32 = arith.constant 0 : i32
    %c0_i32_0 = arith.constant 0 : i32
    %c0_i32_1 = arith.constant 0 : i32
    return %c0_i32, %c0_i32_0 : i32, i32
  }
  func.func @transform_2(%arg0: i32) -> (i32, i32) {
    %c0_i32 = arith.constant 0 : i32
    %c0_i32_0 = arith.constant 0 : i32
    %c0_i32_1 = arith.constant 0 : i32
    return %c0_i32, %c0_i32_0 : i32, i32
  }
  func.func @transform_3(%arg0: i32) -> (i32, i32, i32) {
    %c0_i32 = arith.constant 0 : i32
    %c0_i32_0 = arith.constant 0 : i32
    %c0_i32_1 = arith.constant 0 : i32
    %c0_i32_2 = arith.constant 0 : i32
    return %c0_i32, %c0_i32_0, %c0_i32_1 : i32, i32, i32
  }
  func.func @transform_4(%arg0: i32) -> (i32, i32) {
    %c0_i32 = arith.constant 0 : i32
    %c0_i32_0 = arith.constant 0 : i32
    %c0_i32_1 = arith.constant 0 : i32
    return %c0_i32, %c0_i32_0 : i32, i32
  }
  func.func @transform_5(%arg0: i32) -> (i32, i32) {
    %c0_i32 = arith.constant 0 : i32
    %c0_i32_0 = arith.constant 0 : i32
    %c0_i32_1 = arith.constant 0 : i32
    return %c0_i32, %c0_i32_0 : i32, i32
  }
  func.func @transform_6(%arg0: i32) -> (i32, i32) {
    %c0_i32 = arith.constant 0 : i32
    %c0_i32_0 = arith.constant 0 : i32
    %c0_i32_1 = arith.constant 0 : i32
    return %c0_i32, %c0_i32_0 : i32, i32
  }
  func.func @transform_7(%arg0: i32) -> (i32, i32) {
    %c0_i32 = arith.constant 0 : i32
    %c0_i32_0 = arith.constant 0 : i32
    return %arg0, %c0_i32 : i32, i32
  }
}

</mosaic_0001>

<bundles_post_ra>
// kernel: mynet_forward.1
= control target key start
LH: loop header
LB: loop body
LE: loop exit
PB: predicated region body
PF: predicated region fallthrough
CT: control target
= control target key end

     0   :  { %vm420_vm0 = vcmask 1041408   ;;  %vm341_vm1 = vcmask 687104   ;;  %vm3564_vm2 = vcmask 80896   ;;  %s6984_s1 = inlined_call_operand.vmem [shape: bf16[84,512], index: 1, kind: input, shape index: {}]   ;;  %s6985_s0 = inlined_call_operand.vmem [shape: bf16[26,16,84], index: 0, kind: input, shape index: {}]   ;;  %s6986_s3 = inlined_call_operand.vmem [shape: bf16[13,256,128], index: 3, kind: input, shape index: {}]   ;;  %s6987_s2 = inlined_call_operand.vmem [shape: f32[1,256], index: 2, kind: input, shape index: {}]   ;;  %s6988_s4 = inlined_call_operand.vmem [shape: f32[1,128], index: 4, kind: input, shape index: {}]   ;;  %s6989_s6 = inlined_call_operand.vmem [shape: f32[1,10], index: 6, kind: input, shape index: {}]   ;;  %s6990_s5 = inlined_call_operand.vmem [shape: bf16[128,10], index: 5, kind: input, shape index: {}]   ;;  %s6991_s7 = inlined_call_operand.vmem [shape: f32[16,10], index: 7, kind: output, shape index: {}]  }
   0x1   :  { %v99_v0 = vld [vmem:[%s6984_s1 + $0xa0] sm:$0x33]  ;;  %v100_v1 = vld [vmem:[%s6984_s1 + $0xa8] sm:$0x33]  ;;  %v5175_v7 = vld [vmem:[%s6984_s1 + $0x8c] sm:$0xf0] }
   0x2   :  { %v293_v2 = vunpack.c.l.b16 %v99_v0  ;;  %v294_v3 = vunpack.c.h.b16 %v99_v0  ;;  %v295_v4 = vunpack.c.l.b16 %v100_v1  ;;  %v296_v5 = vunpack.c.h.b16 %v100_v1  ;;  %v3765_v6 = vld [vmem:[%s6984_s1 + $0x80] sm:$0xf]  ;;  %v5173_v12 = vld [vmem:[%s6984_s1 + $0x84] sm:$0xf]  ;;  %v3767_v13 = vld [vmem:[%s6984_s1 + $0x90] sm:$0xf0] }
   0x3   :  { %v3773_v14 = vld [vmem:[%s6984_s1 + $0x88] sm:$0xf]  ;;  %v5176_v15 = vld [vmem:[%s6984_s1 + $0x94] sm:$0xf0]  ;;  %v5174_v16 = vld [vmem:[%s6984_s1 + $0x8c] sm:$0xf]  ;;  %v3766_v22 = vor.u32 %v5175_v7, %v3765_v6  ;;  %v3770_v23 = vor.u32 %v5173_v12, %v3767_v13 }
   0x4   :  { %v317_v8 = vpack.c.b16 %v293_v2, %v293_v2  ;;  %v318_v9 = vpack.c.b16 %v294_v3, %v294_v3  ;;  %v319_v10 = vpack.c.b16 %v295_v4, %v295_v4  ;;  %v320_v11 = vpack.c.b16 %v296_v5, %v296_v5  ;;  %v3775_v17 = vld [vmem:[%s6984_s1 + $0x98] sm:$0xf0]  ;;  %v3749_v24 = vld [vmem:[%s6984_s1 + $0x60] sm:$0xf]  ;;  %v5171_v25 = vld [vmem:[%s6984_s1 + $0x6c] sm:$0xf0] }
   0x5   :  { %v3774_v26 = vor.u32 %v5176_v15, %v3773_v14  ;;  %v3778_v27 = vor.u32 %v5174_v16, %v3775_v17  ;;  %v5169_v28 = vld [vmem:[%s6984_s1 + $0x64] sm:$0xf]  ;;  %v3751_v29 = vld [vmem:[%s6984_s1 + $0x70] sm:$0xf0]  ;;  %v3757_v30 = vld [vmem:[%s6984_s1 + $0x68] sm:$0xf]  ;;  %v3750_v34 = vor.u32 %v5171_v25, %v3749_v24 }
   0x6   :  { %v422_v18 = vsel %vm420_vm0, %v317_v8, 0  ;;  %v425_v19 = vsel %vm420_vm0, %v318_v9, 0  ;;  %v428_v20 = vsel %vm420_vm0, %v319_v10, 0  ;;  %v431_v21 = vsel %vm420_vm0, %v320_v11, 0  ;;  %v5172_v31 = vld [vmem:[%s6984_s1 + $0x74] sm:$0xf0] }
   0x7   :  { %435 = vmatpush.bf16.msra.mxu0 %v422_v18  ;;  %574 = vmatpush.bf16.msra.mxu1 %v425_v19  ;;  %v5170_v32 = vld [vmem:[%s6984_s1 + $0x6c] sm:$0xf]  ;;  %v3759_v33 = vld [vmem:[%s6984_s1 + $0x78] sm:$0xf0]  ;;  %v3754_v35 = vor.u32 %v5169_v28, %v3751_v29  ;;  %v3733_v36 = vld [vmem:[%s6984_s1 + $0x40] sm:$0xf]  ;;  %v3758_v38 = vor.u32 %v5172_v31, %v3757_v30 }
   0x8   :  { %713 = vmatpush.bf16.msra.mxu2 %v428_v20  ;;  %852 = vmatpush.bf16.msra.mxu3 %v431_v21  ;;  %v5167_v37 = vld [vmem:[%s6984_s1 + $0x4c] sm:$0xf0]  ;;  %v3762_v39 = vor.u32 %v5170_v32, %v3759_v33  ;;  %v5165_v40 = vld [vmem:[%s6984_s1 + $0x44] sm:$0xf]  ;;  %v3735_v41 = vld [vmem:[%s6984_s1 + $0x50] sm:$0xf0] }
   0x9   :  { %v3741_v42 = vld [vmem:[%s6984_s1 + $0x48] sm:$0xf]  ;;  %v5168_v43 = vld [vmem:[%s6984_s1 + $0x54] sm:$0xf0]  ;;  %v5166_v44 = vld [vmem:[%s6984_s1 + $0x4c] sm:$0xf]  ;;  %v3734_v46 = vor.u32 %v5167_v37, %v3733_v36  ;;  %v3738_v47 = vor.u32 %v5165_v40, %v3735_v41 }
   0xa   :  { %v3743_v45 = vld [vmem:[%s6984_s1 + $0x58] sm:$0xf0]  ;;  %v3717_v48 = vld [vmem:[%s6984_s1 + $0x20] sm:$0xf]  ;;  %v5163_v49 = vld [vmem:[%s6984_s1 + $0x2c] sm:$0xf0]  ;;  %v3742_v50 = vor.u32 %v5168_v43, %v3741_v42 }
   0xb   :  { %436 = vmatpush.bf16.msra.mxu0 %v3766_v22  ;;  %575 = vmatpush.bf16.msra.mxu1 %v3770_v23  ;;  %v3746_v51 = vor.u32 %v5166_v44, %v3743_v45  ;;  %v5161_v52 = vld [vmem:[%s6984_s1 + $0x24] sm:$0xf]  ;;  %v3719_v53 = vld [vmem:[%s6984_s1 + $0x30] sm:$0xf0]  ;;  %v3725_v54 = vld [vmem:[%s6984_s1 + $0x28] sm:$0xf]  ;;  %v3718_v58 = vor.u32 %v5163_v49, %v3717_v48 }
   0xc   :  { %714 = vmatpush.bf16.msra.mxu2 %v3774_v26  ;;  %853 = vmatpush.bf16.msra.mxu3 %v3778_v27  ;;  %v5164_v55 = vld [vmem:[%s6984_s1 + $0x34] sm:$0xf0]  ;;  %v5162_v56 = vld [vmem:[%s6984_s1 + $0x2c] sm:$0xf]  ;;  %v3727_v57 = vld [vmem:[%s6984_s1 + $0x38] sm:$0xf0]  ;;  %v3722_v59 = vor.u32 %v5161_v52, %v3719_v53 }
   0xd   :  { %v3701_v60 = vld [vmem:[%s6984_s1] sm:$0xf]  ;;  %v5159_v61 = vld [vmem:[%s6984_s1 + $0xc] sm:$0xf0]  ;;  %v3726_v62 = vor.u32 %v5164_v55, %v3725_v54  ;;  %v3730_v63 = vor.u32 %v5162_v56, %v3727_v57  ;;  %v5157_v0 = vld [vmem:[%s6984_s1 + $0x4] sm:$0xf] }
   0xe   :  { %v3703_v1 = vld [vmem:[%s6984_s1 + $0x10] sm:$0xf0]  ;;  %v3709_v2 = vld [vmem:[%s6984_s1 + $0x8] sm:$0xf]  ;;  %v5160_v3 = vld [vmem:[%s6984_s1 + $0x14] sm:$0xf0]  ;;  %v3702_v6 = vor.u32 %v5159_v61, %v3701_v60 }
   0xf   :  { %437 = vmatpush.bf16.msra.mxu0 %v3750_v34  ;;  %576 = vmatpush.bf16.msra.mxu1 %v3754_v35  ;;  %v5158_v4 = vld [vmem:[%s6984_s1 + $0xc] sm:$0xf]  ;;  %v3711_v5 = vld [vmem:[%s6984_s1 + $0x18] sm:$0xf0]  ;;  %v3706_v7 = vor.u32 %v5157_v0, %v3703_v1  ;;  %v3710_v8 = vor.u32 %v5160_v3, %v3709_v2  ;;  %v5131_v10 = vld [vmem:[%s6985_s0] sm:$0xff] }
  0x10   :  { %715 = vmatpush.bf16.msra.mxu2 %v3758_v38  ;;  %854 = vmatpush.bf16.msra.mxu3 %v3762_v39  ;;  %v3714_v9 = vor.u32 %v5158_v4, %v3711_v5  ;;  %v5132_v11 = vld [vmem:[%s6985_s0 + $0x8] sm:$0xff]  ;;  %v5200_v12 = vld [vmem:[%s6986_s3 + $0xb8] sm:$0xff]  ;;  %v5133_v16 = vld [vmem:[%s6985_s0 + $0x10] sm:$0xff] }
  0x11   :  { %v5208_v13 = vld [vmem:[%s6986_s3 + $0xf8] sm:$0xff]  ;;  %v5135_v18 = vld [vmem:[%s6985_s0 + $0x20] sm:$0xff]  ;;  %v5199_v19 = vld [vmem:[%s6986_s3 + $0xb0] sm:$0xff] }
  0x12   :  { %v5184_v14 = vld [vmem:[%s6986_s3 + $0x38] sm:$0xff]  ;;  %v5207_v20 = vld [vmem:[%s6986_s3 + $0xf0] sm:$0xff]  ;;  %v5136_v23 = vld [vmem:[%s6985_s0 + $0x28] sm:$0xff] }
  0x13   :  { %438 = vmatpush.bf16.msra.mxu0 %v3734_v46  ;;  %577 = vmatpush.bf16.msra.mxu1 %v3738_v47  ;;  %v5192_v15 = vld [vmem:[%s6986_s3 + $0x78] sm:$0xff]  ;;  %v5183_v21 = vld [vmem:[%s6986_s3 + $0x30] sm:$0xff]  ;;  %v5139_v26 = vld [vmem:[%s6985_s0 + $0x40] sm:$0xff] }
  0x14   :  { %716 = vmatpush.bf16.msra.mxu2 %v3742_v50  ;;  %855 = vmatpush.bf16.msra.mxu3 %v3746_v51  ;;  %v5134_v17 = vld [vmem:[%s6985_s0 + $0x18] sm:$0xff]  ;;  %v5191_v22 = vld [vmem:[%s6986_s3 + $0x70] sm:$0xff]  ;;  %v5198_v27 = vld [vmem:[%s6986_s3 + $0xa8] sm:$0xff] }
  0x15   :  { %v5137_v24 = vld [vmem:[%s6985_s0 + $0x30] sm:$0xff]  ;;  %v5138_v25 = vld [vmem:[%s6985_s0 + $0x38] sm:$0xff]  ;;  %v5206_v28 = vld [vmem:[%s6986_s3 + $0xe8] sm:$0xff] }
  0x16   :  { %v5182_v33 = vld [vmem:[%s6986_s3 + $0x28] sm:$0xff]  ;;  %v5141_v48 = vld [vmem:[%s6985_s0 + $0x50] sm:$0xff]  ;;  %v5142_v57 = vld [vmem:[%s6985_s0 + $0x58] sm:$0xff] }
  0x17   :  { %439 = vmatpush.bf16.msra.mxu0 %v3718_v58  ;;  %578 = vmatpush.bf16.msra.mxu1 %v3722_v59  ;;  %v5190_v34 = vld [vmem:[%s6986_s3 + $0x68] sm:$0xff]  ;;  %v5197_v60 = vld [vmem:[%s6986_s3 + $0xa0] sm:$0xff] }
  0x18   :  { %717 = vmatpush.bf16.msra.mxu2 %v3726_v62  ;;  %856 = vmatpush.bf16.msra.mxu3 %v3730_v63  ;;  %v5140_v39 = vld [vmem:[%s6985_s0 + $0x48] sm:$0xff]  ;;  %v5205_v61 = vld [vmem:[%s6986_s3 + $0xe0] sm:$0xff] }
  0x19   :  { %v5181_v2 = vld [vmem:[%s6986_s3 + $0x20] sm:$0xff] }
  0x1a   :  { %v5189_v3 = vld [vmem:[%s6986_s3 + $0x60] sm:$0xff] }
  0x1b   :  { %440 = vmatpush.bf16.msra.mxu0 %v3702_v6  ;;  %579 = vmatpush.bf16.msra.mxu1 %v3706_v7  ;;  %v5143_v6 = vld [vmem:[%s6985_s0 + $0x60] sm:$0xff] }
  0x1c   :  { %718 = vmatpush.bf16.msra.mxu2 %v3710_v8  ;;  %857 = vmatpush.bf16.msra.mxu3 %v3714_v9 }
  0x1e   :  { %3779 = vmatmul.msk.bf16.vlgmr.msra.gmra.mxu0 %vm341_vm1, %v5131_v10  ;;  %3805 = vmatmul.msk.bf16.vlgmr.msra.gmra.mxu1 %vm341_vm1, %v5131_v10 }
  0x1f   :  { %3831 = vmatmul.msk.bf16.vlgmr.msra.gmra.mxu2 %vm341_vm1, %v5131_v10  ;;  %3857 = vmatmul.msk.bf16.vlgmr.msra.gmra.mxu3 %vm341_vm1, %v5131_v10 }
  0x20   :  { %1452 = vmatpush.bf16.msrb.mxu0 %v5200_v12  ;;  %1466 = vmatpush.bf16.msrb.mxu1 %v5208_v13 }
  0x21   :  { %1586 = vmatpush.bf16.msrb.mxu2 %v5184_v14  ;;  %1600 = vmatpush.bf16.msrb.mxu3 %v5192_v15  ;;  %v5144_v15 = vld [vmem:[%s6985_s0 + $0x68] sm:$0xff] }
  0x24   :  { %1453 = vmatpush.bf16.msrb.mxu0 %v5199_v19  ;;  %1467 = vmatpush.bf16.msrb.mxu1 %v5207_v20 }
  0x25   :  { %1587 = vmatpush.bf16.msrb.mxu2 %v5183_v21  ;;  %1601 = vmatpush.bf16.msrb.mxu3 %v5191_v22 }
  0x28   :  { %1454 = vmatpush.bf16.msrb.mxu0 %v5198_v27  ;;  %1468 = vmatpush.bf16.msrb.mxu1 %v5206_v28 }
  0x29   :  { %1588 = vmatpush.bf16.msrb.mxu2 %v5182_v33  ;;  %1602 = vmatpush.bf16.msrb.mxu3 %v5190_v34  ;;  %v5196_v33 = vld [vmem:[%s6986_s3 + $0x98] sm:$0xff] }
  0x2a   :  { %v5204_v34 = vld [vmem:[%s6986_s3 + $0xd8] sm:$0xff] }
  0x2c   :  { %1455 = vmatpush.bf16.msrb.mxu0 %v5197_v60  ;;  %1469 = vmatpush.bf16.msrb.mxu1 %v5205_v61  ;;  %v5146_v61 = vld [vmem:[%s6985_s0 + $0x78] sm:$0xff] }
  0x2d   :  { %1589 = vmatpush.bf16.msrb.mxu2 %v5181_v2  ;;  %1603 = vmatpush.bf16.msrb.mxu3 %v5189_v3  ;;  %v5180_v2 = vld [vmem:[%s6986_s3 + $0x18] sm:$0xff] }
  0x2e   :  { %3780 = vmatmul.msk.bf16.gmra.mxu0 %vm341_vm1, %v5132_v11  ;;  %3806 = vmatmul.msk.bf16.gmra.mxu1 %vm341_vm1, %v5132_v11  ;;  %v5188_v3 = vld [vmem:[%s6986_s3 + $0x58] sm:$0xff] }
  0x2f   :  { %3832 = vmatmul.msk.bf16.gmra.mxu2 %vm341_vm1, %v5132_v11  ;;  %3858 = vmatmul.msk.bf16.gmra.mxu3 %vm341_vm1, %v5132_v11 }
  0x30   :  { %1456 = vmatpush.bf16.msrb.mxu0 %v5196_v33  ;;  %1470 = vmatpush.bf16.msrb.mxu1 %v5204_v34 }
  0x31   :  { %1590 = vmatpush.bf16.msrb.mxu2 %v5180_v2  ;;  %1604 = vmatpush.bf16.msrb.mxu3 %v5188_v3  ;;  %v5147_v3 = vld [vmem:[%s6985_s0 + $0x80] sm:$0xff] }
  0x3e   :  { %3781 = vmatmul.msk.bf16.gmra.mxu0 %vm341_vm1, %v5133_v16  ;;  %3807 = vmatmul.msk.bf16.gmra.mxu1 %vm341_vm1, %v5133_v16 }
  0x3f   :  { %3833 = vmatmul.msk.bf16.gmra.mxu2 %vm341_vm1, %v5133_v16  ;;  %3859 = vmatmul.msk.bf16.gmra.mxu3 %vm341_vm1, %v5133_v16 }
  0x4e   :  { %3782 = vmatmul.msk.bf16.gmra.mxu0 %vm341_vm1, %v5134_v17  ;;  %3808 = vmatmul.msk.bf16.gmra.mxu1 %vm341_vm1, %v5134_v17 }
  0x4f   :  { %3834 = vmatmul.msk.bf16.gmra.mxu2 %vm341_vm1, %v5134_v17  ;;  %3860 = vmatmul.msk.bf16.gmra.mxu3 %vm341_vm1, %v5134_v17 }
  0x5e   :  { %3783 = vmatmul.msk.bf16.gmra.mxu0 %vm341_vm1, %v5135_v18  ;;  %3809 = vmatmul.msk.bf16.gmra.mxu1 %vm341_vm1, %v5135_v18 }
  0x5f   :  { %3835 = vmatmul.msk.bf16.gmra.mxu2 %vm341_vm1, %v5135_v18  ;;  %3861 = vmatmul.msk.bf16.gmra.mxu3 %vm341_vm1, %v5135_v18 }
  0x6e   :  { %3784 = vmatmul.msk.bf16.gmra.mxu0 %vm341_vm1, %v5136_v23  ;;  %3810 = vmatmul.msk.bf16.gmra.mxu1 %vm341_vm1, %v5136_v23 }
  0x6f   :  { %3836 = vmatmul.msk.bf16.gmra.mxu2 %vm341_vm1, %v5136_v23  ;;  %3862 = vmatmul.msk.bf16.gmra.mxu3 %vm341_vm1, %v5136_v23 }
  0x7e   :  { %3785 = vmatmul.msk.bf16.gmra.mxu0 %vm341_vm1, %v5137_v24  ;;  %3811 = vmatmul.msk.bf16.gmra.mxu1 %vm341_vm1, %v5137_v24 }
  0x7f   :  { %3837 = vmatmul.msk.bf16.gmra.mxu2 %vm341_vm1, %v5137_v24  ;;  %3863 = vmatmul.msk.bf16.gmra.mxu3 %vm341_vm1, %v5137_v24  ;;  %v5145_v24 = vld [vmem:[%s6985_s0 + $0x70] sm:$0xff] }
  0x8e   :  { %3786 = vmatmul.msk.bf16.gmra.mxu0 %vm341_vm1, %v5138_v25  ;;  %3812 = vmatmul.msk.bf16.gmra.mxu1 %vm341_vm1, %v5138_v25 }
  0x8f   :  { %3838 = vmatmul.msk.bf16.gmra.mxu2 %vm341_vm1, %v5138_v25  ;;  %3864 = vmatmul.msk.bf16.gmra.mxu3 %vm341_vm1, %v5138_v25 }
  0x9b   :  { %v5662_v29 = vpop.f32.mrf.mxu0  ;;  %v5664_v30 = vpop.f32.mrf.mxu1 }
  0x9e   :  { %3787 = vmatmul.msk.bf16.gmra.mxu0 %vm341_vm1, %v5139_v26  ;;  %3813 = vmatmul.msk.bf16.gmra.mxu1 %vm341_vm1, %v5139_v26 }
  0x9f   :  { %3839 = vmatmul.msk.bf16.gmra.mxu2 %vm341_vm1, %v5139_v26  ;;  %3865 = vmatmul.msk.bf16.gmra.mxu3 %vm341_vm1, %v5139_v26 }
  0xa2   :  { %v5670_v31 = vpop.f32.mrf.mxu2  ;;  %v5672_v32 = vpop.f32.mrf.mxu3 }
  0xa3   :  { %v5680_v35 = vpop.f32.mrf.mxu0  ;;  %v5682_v36 = vpop.f32.mrf.mxu1 }
  0xaa   :  { %v5684_v37 = vpop.f32.mrf.mxu2  ;;  %v5686_v38 = vpop.f32.mrf.mxu3 }
  0xab   :  { %v5691_v40 = vpop.f32.mrf.mxu0  ;;  %v5693_v41 = vpop.f32.mrf.mxu1 }
  0xae   :  { %3788 = vmatmul.msk.bf16.gmra.mxu0 %vm341_vm1, %v5140_v39  ;;  %3814 = vmatmul.msk.bf16.gmra.mxu1 %vm341_vm1, %v5140_v39 }
  0xaf   :  { %3840 = vmatmul.msk.bf16.gmra.mxu2 %vm341_vm1, %v5140_v39  ;;  %3866 = vmatmul.msk.bf16.gmra.mxu3 %vm341_vm1, %v5140_v39 }
  0xb2   :  { %v5699_v42 = vpop.f32.mrf.mxu2  ;;  %v5701_v43 = vpop.f32.mrf.mxu3 }
  0xb3   :  { %v5703_v44 = vpop.f32.mrf.mxu0  ;;  %v5705_v45 = vpop.f32.mrf.mxu1 }
  0xba   :  { %v5707_v46 = vpop.f32.mrf.mxu2  ;;  %v5709_v47 = vpop.f32.mrf.mxu3 }
  0xbb   :  { %v5714_v49 = vpop.f32.mrf.mxu0  ;;  %v5716_v50 = vpop.f32.mrf.mxu1 }
  0xbe   :  { %3789 = vmatmul.msk.bf16.gmra.mxu0 %vm341_vm1, %v5141_v48  ;;  %3815 = vmatmul.msk.bf16.gmra.mxu1 %vm341_vm1, %v5141_v48 }
  0xbf   :  { %3841 = vmatmul.msk.bf16.gmra.mxu2 %vm341_vm1, %v5141_v48  ;;  %3867 = vmatmul.msk.bf16.gmra.mxu3 %vm341_vm1, %v5141_v48 }
  0xc2   :  { %v5722_v51 = vpop.f32.mrf.mxu2  ;;  %v5724_v52 = vpop.f32.mrf.mxu3 }
  0xc3   :  { %v5726_v53 = vpop.f32.mrf.mxu0  ;;  %v5728_v54 = vpop.f32.mrf.mxu1 }
  0xca   :  { %v5730_v55 = vpop.f32.mrf.mxu2  ;;  %v5732_v56 = vpop.f32.mrf.mxu3 }
  0xcb   :  { %v5737_v58 = vpop.f32.mrf.mxu0  ;;  %v5739_v59 = vpop.f32.mrf.mxu1 }
  0xcc   :  { %6992 = vst [vmem:[#allocation2_spill] sm:$0xff] %v5737_v58 }
  0xcd   :  { %6993 = vst [vmem:[#allocation3_spill] sm:$0xff] %v5739_v59  ;;  %v5233_v59 = vld [vmem:[%s6986_s3 + $0x1c0] sm:$0xff] }
  0xce   :  { %3790 = vmatmul.msk.bf16.gmra.mxu0 %vm341_vm1, %v5142_v57  ;;  %3816 = vmatmul.msk.bf16.gmra.mxu1 %vm341_vm1, %v5142_v57 }
  0xcf   :  { %3842 = vmatmul.msk.bf16.gmra.mxu2 %vm341_vm1, %v5142_v57  ;;  %3868 = vmatmul.msk.bf16.gmra.mxu3 %vm341_vm1, %v5142_v57 }
  0xd2   :  { %v5751_v62 = vpop.f32.mrf.mxu2  ;;  %v5753_v63 = vpop.f32.mrf.mxu3 }
  0xd3   :  { %v5755_v0 = vpop.f32.mrf.mxu0  ;;  %v5757_v1 = vpop.f32.mrf.mxu1 }
  0xd4   :  { %6994 = vst [vmem:[#allocation4_spill] sm:$0xff] %v5755_v0  ;;  %v5225_v0 = vld [vmem:[%s6986_s3 + $0x180] sm:$0xff] }
  0xd5   :  { %6995 = vst [vmem:[#allocation5_spill] sm:$0xff] %v5757_v1  ;;  %v5217_v1 = vld [vmem:[%s6986_s3 + $0x140] sm:$0xff] }
  0xda   :  { %v5765_v4 = vpop.f32.mrf.mxu2  ;;  %v5767_v5 = vpop.f32.mrf.mxu3 }
  0xdb   :  { %v5772_v7 = vpop.f32.mrf.mxu0  ;;  %v5774_v8 = vpop.f32.mrf.mxu1 }
  0xdc   :  { %6996 = vst [vmem:[#allocation6_spill] sm:$0xff] %v5772_v7 }
  0xdd   :  { %6997 = vst [vmem:[#allocation7_spill] sm:$0xff] %v5774_v8  ;;  %v5237_v8 = vld [vmem:[%s6986_s3 + $0x1e0] sm:$0xff] }
  0xde   :  { %3791 = vmatmul.msk.bf16.gmra.mxu0 %vm341_vm1, %v5143_v6  ;;  %3817 = vmatmul.msk.bf16.gmra.mxu1 %vm341_vm1, %v5143_v6 }
  0xdf   :  { %3843 = vmatmul.msk.bf16.gmra.mxu2 %vm341_vm1, %v5143_v6  ;;  %3869 = vmatmul.msk.bf16.gmra.mxu3 %vm341_vm1, %v5143_v6 }
  0xe2   :  { %v5780_v9 = vpop.f32.mrf.mxu2  ;;  %v5782_v10 = vpop.f32.mrf.mxu3 }
  0xe3   :  { %6998 = vst [vmem:[#allocation8_spill] sm:$0xff] %v5780_v9  ;;  %v5784_v11 = vpop.f32.mrf.mxu0  ;;  %v5786_v12 = vpop.f32.mrf.mxu1 }
  0xe4   :  { %6999 = vst [vmem:[#allocation9_spill] sm:$0xff] %v5782_v10  ;;  %v5155_v10 = vld [vmem:[%s6985_s0 + $0xc0] sm:$0xff] }
  0xe5   :  { %7000 = vst [vmem:[#allocation10_spill] sm:$0xff] %v5784_v11  ;;  %v5229_v11 = vld [vmem:[%s6986_s3 + $0x1a0] sm:$0xff] }
  0xe6   :  { %7001 = vst [vmem:[#allocation11_spill] sm:$0xff] %v5786_v12  ;;  %v5221_v12 = vld [vmem:[%s6986_s3 + $0x160] sm:$0xff] }
  0xea   :  { %v5788_v13 = vpop.f32.mrf.mxu2  ;;  %v5790_v14 = vpop.f32.mrf.mxu3 }
  0xeb   :  { %7002 = vst [vmem:[#allocation12_spill] sm:$0xff] %v5788_v13  ;;  %v5795_v16 = vpop.f32.mrf.mxu0  ;;  %v5797_v17 = vpop.f32.mrf.mxu1  ;;  %v5235_v13 = vld [vmem:[%s6986_s3 + $0x1d0] sm:$0xff] }
  0xec   :  { %7003 = vst [vmem:[#allocation13_spill] sm:$0xff] %v5790_v14  ;;  %v5227_v14 = vld [vmem:[%s6986_s3 + $0x190] sm:$0xff] }
  0xed   :  { %7004 = vst [vmem:[#allocation14_spill] sm:$0xff] %v5795_v16 }
  0xee   :  { %7005 = vst [vmem:[#allocation15_spill] sm:$0xff] %v5797_v17  ;;  %3792 = vmatmul.msk.bf16.gmra.mxu0 %vm341_vm1, %v5144_v15  ;;  %3818 = vmatmul.msk.bf16.gmra.mxu1 %vm341_vm1, %v5144_v15 }
  0xef   :  { %3844 = vmatmul.msk.bf16.gmra.mxu2 %vm341_vm1, %v5144_v15  ;;  %3870 = vmatmul.msk.bf16.gmra.mxu3 %vm341_vm1, %v5144_v15 }
  0xf2   :  { %v5803_v18 = vpop.f32.mrf.mxu2  ;;  %v5805_v19 = vpop.f32.mrf.mxu3 }
  0xf3   :  { %7006 = vst [vmem:[#allocation16_spill] sm:$0xff] %v5803_v18  ;;  %v5807_v20 = vpop.f32.mrf.mxu0  ;;  %v5809_v21 = vpop.f32.mrf.mxu1  ;;  %v5213_v18 = vld [vmem:[%s6986_s3 + $0x120] sm:$0xff] }
  0xf4   :  { %7007 = vst [vmem:[#allocation17_spill] sm:$0xff] %v5805_v19 }
  0xf5   :  { %7008 = vst [vmem:[#allocation18_spill] sm:$0xff] %v5807_v20 }
  0xf6   :  { %7009 = vst [vmem:[#allocation19_spill] sm:$0xff] %v5809_v21 }
  0xfa   :  { %v5811_v22 = vpop.f32.mrf.mxu2  ;;  %v5813_v23 = vpop.f32.mrf.mxu3 }
  0xfb   :  { %7010 = vst [vmem:[#allocation20_spill] sm:$0xff] %v5811_v22  ;;  %v5818_v25 = vpop.f32.mrf.mxu0  ;;  %v5820_v26 = vpop.f32.mrf.mxu1  ;;  %v5240_v22 = vld [vmem:[%s6986_s3 + $0x1f8] sm:$0xff] }
  0xfc   :  { %7011 = vst [vmem:[#allocation21_spill] sm:$0xff] %v5813_v23  ;;  %v5232_v23 = vld [vmem:[%s6986_s3 + $0x1b8] sm:$0xff] }
  0xfd   :  { %7012 = vst [vmem:[#allocation22_spill] sm:$0xff] %v5818_v25 }
  0xfe   :  { %7013 = vst [vmem:[#allocation23_spill] sm:$0xff] %v5820_v26  ;;  %3793 = vmatmul.msk.bf16.gmra.mxu0 %vm341_vm1, %v5145_v24  ;;  %3819 = vmatmul.msk.bf16.gmra.mxu1 %vm341_vm1, %v5145_v24 }
  0xff   :  { %3845 = vmatmul.msk.bf16.gmra.mxu2 %vm341_vm1, %v5145_v24  ;;  %3871 = vmatmul.msk.bf16.gmra.mxu3 %vm341_vm1, %v5145_v24 }
 0x102   :  { %v5826_v27 = vpop.f32.mrf.mxu2  ;;  %v5828_v28 = vpop.f32.mrf.mxu3 }
 0x103   :  { %7014 = vst [vmem:[#allocation24_spill] sm:$0xff] %v5826_v27  ;;  %v5836_v39 = vpop.f32.mrf.mxu0  ;;  %v5838_v48 = vpop.f32.mrf.mxu1  ;;  %v5178_v27 = vld [vmem:[%s6986_s3 + $0x8] sm:$0xff] }
 0x104   :  { %7015 = vst [vmem:[#allocation25_spill] sm:$0xff] %v5828_v28 }
 0x105   :  { %7016 = vst [vmem:[#allocation26_spill] sm:$0xff] %v5836_v39 }
 0x106   :  { %7017 = vst [vmem:[#allocation27_spill] sm:$0xff] %v5838_v48  ;;  %v5153_v48 = vld [vmem:[%s6985_s0 + $0xb0] sm:$0xff] }
 0x10a   :  { %v5840_v57 = vpop.f32.mrf.mxu2  ;;  %v5842_v60 = vpop.f32.mrf.mxu3 }
 0x10b   :  { %7018 = vst [vmem:[#allocation28_spill] sm:$0xff] %v5840_v57  ;;  %v5853_v6 = vpop.f32.mrf.mxu0  ;;  %v5855_v15 = vpop.f32.mrf.mxu1  ;;  %v5224_v57 = vld [vmem:[%s6986_s3 + $0x178] sm:$0xff] }
 0x10c   :  { %7019 = vst [vmem:[#allocation29_spill] sm:$0xff] %v5842_v60  ;;  %v5201_v60 = vld [vmem:[%s6986_s3 + $0xc0] sm:$0xff] }
 0x10d   :  { %7020 = vst [vmem:[#allocation30_spill] sm:$0xff] %v5853_v6 }
 0x10e   :  { %7021 = vst [vmem:[#allocation31_spill] sm:$0xff] %v5855_v15  ;;  %3794 = vmatmul.msk.bf16.gmra.mxu0 %vm341_vm1, %v5146_v61  ;;  %3820 = vmatmul.msk.bf16.gmra.mxu1 %vm341_vm1, %v5146_v61 }
 0x10f   :  { %3846 = vmatmul.msk.bf16.gmra.mxu2 %vm341_vm1, %v5146_v61  ;;  %3872 = vmatmul.msk.bf16.gmra.mxu3 %vm341_vm1, %v5146_v61 }
 0x112   :  { %v5861_v24 = vpop.f32.mrf.mxu2  ;;  %v5863_v33 = vpop.f32.mrf.mxu3 }
 0x113   :  { %7022 = vst [vmem:[#allocation32_spill] sm:$0xff] %v5861_v24  ;;  %v5865_v34 = vpop.f32.mrf.mxu0  ;;  %v5867_v26 = vpop.f32.mrf.mxu1 }
 0x114   :  { %7023 = vst [vmem:[#allocation33_spill] sm:$0xff] %v5863_v33 }
 0x115   :  { %7024 = vst [vmem:[#allocation34_spill] sm:$0xff] %v5865_v34 }
 0x116   :  { %7025 = vst [vmem:[#allocation35_spill] sm:$0xff] %v5867_v26 }
 0x11a   :  { %v5869_v6 = vpop.f32.mrf.mxu2  ;;  %v5871_v2 = vpop.f32.mrf.mxu3 }
 0x11b   :  { %7026 = vst [vmem:[#allocation36_spill] sm:$0xff] %v5869_v6  ;;  %v5876_v15 = vpop.f32.mrf.mxu0  ;;  %v5878_v25 = vpop.f32.mrf.mxu1 }
 0x11c   :  { %7027 = vst [vmem:[#allocation37_spill] sm:$0xff] %v5871_v2 }
 0x11d   :  { %7028 = vst [vmem:[#allocation38_spill] sm:$0xff] %v5876_v15 }
 0x11e   :  { %7029 = vst [vmem:[#allocation39_spill] sm:$0xff] %v5878_v25  ;;  %3795 = vmatmul.msk.bf16.gmra.mxu0 %vm341_vm1, %v5147_v3  ;;  %3821 = vmatmul.msk.bf16.gmra.mxu1 %vm341_vm1, %v5147_v3  ;;  %v5148_v25 = vld [vmem:[%s6985_s0 + $0x88] sm:$0xff] }
 0x11f   :  { %3847 = vmatmul.msk.bf16.gmra.mxu2 %vm341_vm1, %v5147_v3  ;;  %3873 = vmatmul.msk.bf16.gmra.mxu3 %vm341_vm1, %v5147_v3 }
 0x122   :  { %v5884_v61 = vpop.f32.mrf.mxu2  ;;  %v5886_v6 = vpop.f32.mrf.mxu3 }
 0x123   :  { %7030 = vst [vmem:[#allocation40_spill] sm:$0xff] %v5884_v61  ;;  %v5888_v2 = vpop.f32.mrf.mxu0  ;;  %v5890_v26 = vpop.f32.mrf.mxu1 }
 0x124   :  { %7031 = vst [vmem:[#allocation41_spill] sm:$0xff] %v5886_v6 }
 0x125   :  { %7032 = vst [vmem:[#allocation42_spill] sm:$0xff] %v5888_v2 }
 0x126   :  { %7033 = vst [vmem:[#allocation43_spill] sm:$0xff] %v5890_v26 }
 0x12a   :  { %v5892_v34 = vpop.f32.mrf.mxu2  ;;  %v5894_v15 = vpop.f32.mrf.mxu3 }
 0x12b   :  { %7034 = vst [vmem:[#allocation44_spill] sm:$0xff] %v5892_v34  ;;  %v5899_v33 = vpop.f32.mrf.mxu0  ;;  %v5901_v24 = vpop.f32.mrf.mxu1 }
 0x12c   :  { %7035 = vst [vmem:[#allocation45_spill] sm:$0xff] %v5894_v15 }
 0x12d   :  { %7036 = vst [vmem:[#allocation46_spill] sm:$0xff] %v5899_v33  ;;  %v5203_v33 = vld [vmem:[%s6986_s3 + $0xd0] sm:$0xff] }
 0x12e   :  { %7037 = vst [vmem:[#allocation47_spill] sm:$0xff] %v5901_v24  ;;  %3796 = vmatmul.msk.bf16.gmra.mxu0 %vm341_vm1, %v5148_v25  ;;  %3822 = vmatmul.msk.bf16.gmra.mxu1 %vm341_vm1, %v5148_v25  ;;  %v5195_v24 = vld [vmem:[%s6986_s3 + $0x90] sm:$0xff] }
 0x12f   :  { %3848 = vmatmul.msk.bf16.gmra.mxu2 %vm341_vm1, %v5148_v25  ;;  %3874 = vmatmul.msk.bf16.gmra.mxu3 %vm341_vm1, %v5148_v25 }
 0x130   :  { %1457 = vmatpush.bf16.msrb.mxu0 %v5195_v24  ;;  %1471 = vmatpush.bf16.msrb.mxu1 %v5203_v33  ;;  %v5187_v24 = vld [vmem:[%s6986_s3 + $0x50] sm:$0xff] }
 0x131   :  { %1605 = vmatpush.bf16.msrb.mxu3 %v5187_v24  ;;  %v5150_v24 = vld [vmem:[%s6985_s0 + $0x98] sm:$0xff] }
 0x132   :  { %v5907_v3 = vpop.f32.mrf.mxu2  ;;  %v5909_v26 = vpop.f32.mrf.mxu3 }
 0x133   :  { %7038 = vst [vmem:[#allocation48_spill] sm:$0xff] %v5907_v3  ;;  %v5911_v2 = vpop.f32.mrf.mxu0  ;;  %v5913_v6 = vpop.f32.mrf.mxu1  ;;  %v5179_v3 = vld [vmem:[%s6986_s3 + $0x10] sm:$0xff] }
 0x134   :  { %7039 = vst [vmem:[#allocation49_spill] sm:$0xff] %v5909_v26  ;;  %1591 = vmatpush.bf16.msrb.mxu2 %v5179_v3 }
 0x135   :  { %7040 = vst [vmem:[#allocation50_spill] sm:$0xff] %v5911_v2  ;;  %v5149_v2 = vld [vmem:[%s6985_s0 + $0x90] sm:$0xff] }
 0x136   :  { %7041 = vst [vmem:[#allocation51_spill] sm:$0xff] %v5913_v6 }
 0x138   :  { %1592 = vmatpush.bf16.msrb.mxu2 %v5178_v27  ;;  %v5177_v27 = vld [vmem:[%s6986_s3] sm:$0xff] }
 0x13a   :  { %v5921_v61 = vpop.f32.mrf.mxu2  ;;  %v5923_v25 = vpop.f32.mrf.mxu3 }
 0x13b   :  { %7042 = vst [vmem:[#allocation52_spill] sm:$0xff] %v5921_v61  ;;  %v5928_v26 = vpop.f32.mrf.mxu0  ;;  %v5930_v6 = vpop.f32.mrf.mxu1 }
 0x13c   :  { %7043 = vst [vmem:[#allocation53_spill] sm:$0xff] %v5923_v25  ;;  %1593 = vmatpush.bf16.msrb.mxu2 %v5177_v27  ;;  %v5231_v27 = vld [vmem:[%s6986_s3 + $0x1b0] sm:$0xff] }
 0x13d   :  { %7044 = vst [vmem:[#allocation54_spill] sm:$0xff] %v5928_v26 }
 0x13e   :  { %7045 = vst [vmem:[#allocation55_spill] sm:$0xff] %v5930_v6  ;;  %3797 = vmatmul.msk.bf16.gmra.mxu0 %vm341_vm1, %v5149_v2  ;;  %3823 = vmatmul.msk.bf16.gmra.mxu1 %vm341_vm1, %v5149_v2 }
 0x13f   :  { %3849 = vmatmul.msk.bf16.gmra.mxu2 %vm341_vm1, %v5149_v2  ;;  %3875 = vmatmul.msk.bf16.gmra.mxu3 %vm341_vm1, %v5149_v2 }
 0x140   :  { %1922 = vmatpush.bf16.msra.mxu2 %v5232_v23  ;;  %v5222_v23 = vld [vmem:[%s6986_s3 + $0x168] sm:$0xff] }
 0x142   :  { %v5942_v33 = vpop.f32.mrf.mxu2  ;;  %v5944_v6 = vpop.f32.mrf.mxu3 }
 0x143   :  { %7046 = vst [vmem:[#allocation56_spill] sm:$0xff] %v5942_v33  ;;  %v5946_v26 = vpop.f32.mrf.mxu0  ;;  %v5948_v25 = vpop.f32.mrf.mxu1 }
 0x144   :  { %7047 = vst [vmem:[#allocation57_spill] sm:$0xff] %v5944_v6  ;;  %1923 = vmatpush.bf16.msra.mxu2 %v5231_v27  ;;  %v5154_v27 = vld [vmem:[%s6985_s0 + $0xb8] sm:$0xff] }
 0x145   :  { %7048 = vst [vmem:[#allocation58_spill] sm:$0xff] %v5946_v26 }
 0x146   :  { %7049 = vst [vmem:[#allocation59_spill] sm:$0xff] %v5948_v25 }
 0x14a   :  { %v5950_v61 = vpop.f32.mrf.mxu2  ;;  %v5952_v3 = vpop.f32.mrf.mxu3 }
 0x14b   :  { %7050 = vst [vmem:[#allocation60_spill] sm:$0xff] %v5950_v61  ;;  %v5957_v15 = vpop.f32.mrf.mxu0  ;;  %v5959_v34 = vpop.f32.mrf.mxu1 }
 0x14c   :  { %7051 = vst [vmem:[#allocation61_spill] sm:$0xff] %v5952_v3 }
 0x14d   :  { %7052 = vst [vmem:[#allocation62_spill] sm:$0xff] %v5957_v15 }
 0x14e   :  { %7053 = vst [vmem:[#allocation63_spill] sm:$0xff] %v5959_v34  ;;  %3798 = vmatmul.msk.bf16.gmra.mxu0 %vm341_vm1, %v5150_v24  ;;  %3824 = vmatmul.msk.bf16.gmra.mxu1 %vm341_vm1, %v5150_v24  ;;  %v5151_v34 = vld [vmem:[%s6985_s0 + $0xa0] sm:$0xff] }
 0x14f   :  { %3850 = vmatmul.msk.bf16.gmra.mxu2 %vm341_vm1, %v5150_v24  ;;  %3876 = vmatmul.msk.bf16.gmra.mxu3 %vm341_vm1, %v5150_v24 }
 0x152   :  { %v5965_v2 = vpop.f32.mrf.mxu2  ;;  %v5967_v6 = vpop.f32.mrf.mxu3 }
 0x153   :  { %7054 = vst [vmem:[#allocation64_spill] sm:$0xff] %v5965_v2  ;;  %v5969_v25 = vpop.f32.mrf.mxu0  ;;  %v5971_v26 = vpop.f32.mrf.mxu1 }
 0x154   :  { %7055 = vst [vmem:[#allocation65_spill] sm:$0xff] %v5967_v6 }
 0x155   :  { %7056 = vst [vmem:[#allocation66_spill] sm:$0xff] %v5969_v25 }
 0x156   :  { %7057 = vst [vmem:[#allocation67_spill] sm:$0xff] %v5971_v26 }
 0x15a   :  { %v5973_v33 = vpop.f32.mrf.mxu2  ;;  %v5975_v15 = vpop.f32.mrf.mxu3 }
 0x15b   :  { %7058 = vst [vmem:[#allocation68_spill] sm:$0xff] %v5973_v33  ;;  %v5980_v3 = vpop.f32.mrf.mxu0  ;;  %v5982_v61 = vpop.f32.mrf.mxu1 }
 0x15c   :  { %7059 = vst [vmem:[#allocation69_spill] sm:$0xff] %v5975_v15 }
 0x15d   :  { %7060 = vst [vmem:[#allocation70_spill] sm:$0xff] %v5980_v3 }
 0x15e   :  { %7061 = vst [vmem:[#allocation71_spill] sm:$0xff] %v5982_v61  ;;  %3799 = vmatmul.msk.bf16.gmra.mxu0 %vm341_vm1, %v5151_v34  ;;  %3825 = vmatmul.msk.bf16.gmra.mxu1 %vm341_vm1, %v5151_v34  ;;  %v5152_v61 = vld [vmem:[%s6985_s0 + $0xa8] sm:$0xff] }
 0x15f   :  { %3851 = vmatmul.msk.bf16.gmra.mxu2 %vm341_vm1, %v5151_v34  ;;  %3877 = vmatmul.msk.bf16.gmra.mxu3 %vm341_vm1, %v5151_v34 }
 0x162   :  { %v5988_v24 = vpop.f32.mrf.mxu2  ;;  %v5990_v33 = vpop.f32.mrf.mxu3 }
 0x163   :  { %7062 = vst [vmem:[#allocation72_spill] sm:$0xff] %v5988_v24  ;;  %v5992_v15 = vpop.f32.mrf.mxu0  ;;  %v5994_v26 = vpop.f32.mrf.mxu1  ;;  %v5194_v24 = vld [vmem:[%s6986_s3 + $0x88] sm:$0xff] }
 0x164   :  { %7063 = vst [vmem:[#allocation73_spill] sm:$0xff] %v5990_v33  ;;  %1458 = vmatpush.bf16.msrb.mxu0 %v5194_v24  ;;  %v5193_v24 = vld [vmem:[%s6986_s3 + $0x80] sm:$0xff] }
 0x165   :  { %7064 = vst [vmem:[#allocation74_spill] sm:$0xff] %v5992_v15 }
 0x166   :  { %7065 = vst [vmem:[#allocation75_spill] sm:$0xff] %v5994_v26 }
 0x168   :  { %1459 = vmatpush.bf16.msrb.mxu0 %v5193_v24  ;;  %v5223_v24 = vld [vmem:[%s6986_s3 + $0x170] sm:$0xff] }
 0x16a   :  { %v5996_v25 = vpop.f32.mrf.mxu2  ;;  %v5998_v3 = vpop.f32.mrf.mxu3 }
 0x16b   :  { %7066 = vst [vmem:[#allocation76_spill] sm:$0xff] %v5996_v25  ;;  %v6003_v6 = vpop.f32.mrf.mxu0  ;;  %v6005_v2 = vpop.f32.mrf.mxu1 }
 0x16c   :  { %7067 = vst [vmem:[#allocation77_spill] sm:$0xff] %v5998_v3  ;;  %v5202_v3 = vld [vmem:[%s6986_s3 + $0xc8] sm:$0xff] }
 0x16d   :  { %1472 = vmatpush.bf16.msrb.mxu1 %v5202_v3  ;;  %v5186_v3 = vld [vmem:[%s6986_s3 + $0x48] sm:$0xff] }
 0x16e   :  { %3800 = vmatmul.msk.bf16.gmra.mxu0 %vm341_vm1, %v5152_v61  ;;  %3826 = vmatmul.msk.bf16.gmra.mxu1 %vm341_vm1, %v5152_v61 }
 0x16f   :  { %3852 = vmatmul.msk.bf16.gmra.mxu2 %vm341_vm1, %v5152_v61  ;;  %3878 = vmatmul.msk.bf16.gmra.mxu3 %vm341_vm1, %v5152_v61 }
 0x170   :  { %1606 = vmatpush.bf16.msrb.mxu3 %v5186_v3  ;;  %v5185_v3 = vld [vmem:[%s6986_s3 + $0x40] sm:$0xff] }
 0x171   :  { %1473 = vmatpush.bf16.msrb.mxu1 %v5201_v60  ;;  %v5215_v60 = vld [vmem:[%s6986_s3 + $0x130] sm:$0xff] }
 0x172   :  { %v6011_v34 = vpop.f32.mrf.mxu2  ;;  %v6013_v26 = vpop.f32.mrf.mxu3 }
 0x173   :  { %v6015_v15 = vpop.f32.mrf.mxu0  ;;  %v6017_v33 = vpop.f32.mrf.mxu1 }
 0x174   :  { %1607 = vmatpush.bf16.msrb.mxu3 %v5185_v3  ;;  %v5239_v3 = vld [vmem:[%s6986_s3 + $0x1f0] sm:$0xff] }
 0x175   :  { %1767 = vmatpush.bf16.msra.mxu1 %v5224_v57  ;;  %v5230_v57 = vld [vmem:[%s6986_s3 + $0x1a8] sm:$0xff] }
 0x176   :  { %1924 = vmatpush.bf16.msra.mxu2 %v5230_v57  ;;  %v5228_v57 = vld [vmem:[%s6986_s3 + $0x198] sm:$0xff] }
 0x178   :  { %1936 = vmatpush.bf16.msra.mxu3 %v5240_v22  ;;  %v5214_v22 = vld [vmem:[%s6986_s3 + $0x128] sm:$0xff] }
 0x179   :  { %1768 = vmatpush.bf16.msra.mxu1 %v5223_v24 }
 0x17a   :  { %v6025_v25 = vpop.f32.mrf.mxu2  ;;  %v6027_v61 = vpop.f32.mrf.mxu3  ;;  %1925 = vmatpush.bf16.msra.mxu2 %v5229_v11  ;;  %v5219_v11 = vld [vmem:[%s6986_s3 + $0x150] sm:$0xff] }
 0x17b   :  { %v6032_v39 = vpop.f32.mrf.mxu0  ;;  %v6034_v28 = vpop.f32.mrf.mxu1 }
 0x17c   :  { %1937 = vmatpush.bf16.msra.mxu3 %v5239_v3 }
 0x17d   :  { %1769 = vmatpush.bf16.msra.mxu1 %v5222_v23  ;;  %v5220_v23 = vld [vmem:[%s6986_s3 + $0x158] sm:$0xff] }
 0x17e   :  { %3801 = vmatmul.msk.bf16.gmra.mxu0 %vm341_vm1, %v5153_v48  ;;  %3827 = vmatmul.msk.bf16.gmra.mxu1 %vm341_vm1, %v5153_v48 }
 0x17f   :  { %3853 = vmatmul.msk.bf16.gmra.mxu2 %vm341_vm1, %v5153_v48  ;;  %3879 = vmatmul.msk.bf16.gmra.mxu3 %vm341_vm1, %v5153_v48  ;;  %v5216_v48 = vld [vmem:[%s6986_s3 + $0x138] sm:$0xff] }
 0x180   :  { %1753 = vmatpush.bf16.msra.mxu0 %v5216_v48  ;;  %v5238_v48 = vld [vmem:[%s6986_s3 + $0x1e8] sm:$0xff]  ;;  %1926 = vmatpush.bf16.msra.mxu2 %v5228_v57 }
 0x181   :  { %1938 = vmatpush.bf16.msra.mxu3 %v5238_v48  ;;  %1770 = vmatpush.bf16.msra.mxu1 %v5221_v12  ;;  %v5236_v48 = vld [vmem:[%s6986_s3 + $0x1d8] sm:$0xff]  ;;  %v5226_v57 = vld [vmem:[%s6986_s3 + $0x188] sm:$0xff] }
 0x182   :  { %v6070_v21 = vpop.f32.mrf.mxu2  ;;  %v6072_v20 = vpop.f32.mrf.mxu3 }
 0x183   :  { %v6074_v17 = vpop.f32.mrf.mxu0  ;;  %v6076_v16 = vpop.f32.mrf.mxu1 }
 0x184   :  { %1754 = vmatpush.bf16.msra.mxu0 %v5215_v60  ;;  %1927 = vmatpush.bf16.msra.mxu2 %v5227_v14 }
 0x185   :  { %1939 = vmatpush.bf16.msra.mxu3 %v5237_v8  ;;  %1771 = vmatpush.bf16.msra.mxu1 %v5220_v23  ;;  %v5211_v8 = vld [vmem:[%s6986_s3 + $0x110] sm:$0xff]  ;;  %v5218_v23 = vld [vmem:[%s6986_s3 + $0x148] sm:$0xff] }
 0x188   :  { %1755 = vmatpush.bf16.msra.mxu0 %v5214_v22  ;;  %v5212_v22 = vld [vmem:[%s6986_s3 + $0x118] sm:$0xff]  ;;  %1928 = vmatpush.bf16.msra.mxu2 %v5226_v57  ;;  %v992_v57 = vmax.f32 %v5672_v32, %v6013_v26  ;;  %v989_v32 = vmax.f32 %v5662_v29, %v6003_v6  ;;  %v995_v26 = vmax.f32 %v5684_v37, %v6025_v25 }
 0x189   :  { %1940 = vmatpush.bf16.msra.mxu3 %v5236_v48  ;;  %1772 = vmatpush.bf16.msra.mxu1 %v5219_v11  ;;  %v5234_v48 = vld [vmem:[%s6986_s3 + $0x1c8] sm:$0xff]  ;;  %v1002_v29 = vmax.f32 %v5705_v45, %v6076_v16  ;;  %v993_v37 = vmax.f32 %v5680_v35, %v6015_v15 }
 0x18a   :  { %v6102_v60 = vpop.f32.mrf.mxu2  ;;  %v6104_v24 = vpop.f32.mrf.mxu3  ;;  %v5156_v35 = vld [vmem:[%s6985_s0 + $0xc8] sm:$0xff] }
 0x18b   :  { %v6109_v3 = vpop.f32.mrf.mxu0  ;;  %v6111_v19 = vpop.f32.mrf.mxu1 }
 0x18c   :  { %1756 = vmatpush.bf16.msra.mxu0 %v5213_v18  ;;  %1929 = vmatpush.bf16.msra.mxu2 %v5225_v0 }
 0x18d   :  { %1941 = vmatpush.bf16.msra.mxu3 %v5235_v13  ;;  %1773 = vmatpush.bf16.msra.mxu1 %v5218_v23  ;;  %v5209_v13 = vld [vmem:[%s6986_s3 + $0x100] sm:$0xff]  ;;  %v991_v23 = vmax.f32 %v5670_v31, %v6011_v34  ;;  %v996_v34 = vmax.f32 %v5686_v38, %v6027_v61  ;;  %v994_v38 = vmax.f32 %v5682_v36, %v6017_v33 }
 0x18e   :  { %3802 = vmatmul.msk.bf16.gmra.mxu0 %vm341_vm1, %v5154_v27  ;;  %3828 = vmatmul.msk.bf16.gmra.mxu1 %vm341_vm1, %v5154_v27 }
 0x18f   :  { %3854 = vmatmul.msk.bf16.gmra.mxu2 %vm341_vm1, %v5154_v27  ;;  %3880 = vmatmul.msk.bf16.gmra.mxu3 %vm341_vm1, %v5154_v27  ;;  %v1093_v6 = vmax.f32 %v989_v32, %v991_v23 }
 0x190   :  { %1757 = vmatpush.bf16.msra.mxu0 %v5212_v22  ;;  %v5210_v22 = vld [vmem:[%s6986_s3 + $0x108] sm:$0xff] }
 0x191   :  { %1942 = vmatpush.bf16.msra.mxu3 %v5234_v48  ;;  %1774 = vmatpush.bf16.msra.mxu1 %v5217_v1  ;;  %v990_v1 = vmax.f32 %v5664_v30, %v6005_v2 }
 0x192   :  { %v6141_v18 = vpop.f32.mrf.mxu2  ;;  %v6143_v12 = vpop.f32.mrf.mxu3 }
 0x193   :  { %v6145_v27 = vpop.f32.mrf.mxu0  ;;  %v6147_v7 = vpop.f32.mrf.mxu1  ;;  %v1094_v30 = vmax.f32 %v990_v1, %v992_v57 }
 0x194   :  { %1758 = vmatpush.bf16.msra.mxu0 %v5211_v8 }
 0x195   :  { %1943 = vmatpush.bf16.msra.mxu3 %v5233_v59  ;;  %v1004_v59 = vmax.f32 %v5709_v47, %v6104_v24  ;;  %v1000_v47 = vmax.f32 %v5701_v43, %v6072_v20  ;;  %v998_v43 = vmax.f32 %v5693_v41, %v6034_v28 }
 0x197   :  { %v1098_v45 = vmax.f32 %v998_v43, %v1000_v47 }
 0x198   :  { %1759 = vmatpush.bf16.msra.mxu0 %v5210_v22  ;;  %v1145_v22 = vld [vmem:[%s6987_s2] sm:$0x3] }
 0x199   :  { %v6211_v58 = vperm.slane %v1145_v22, 0 }
 0x19a   :  { %v6173_v8 = vpop.f32.mrf.mxu2  ;;  %v6175_v11 = vpop.f32.mrf.mxu3 }
 0x19b   :  { %v6180_v9 = vpop.f32.mrf.mxu0  ;;  %v6182_v14 = vpop.f32.mrf.mxu1  ;;  %v1151_v36 = vadd.f32 %v6211_v58, %v1093_v6  ;;  %v1011_v23 = vmax.f32 %v5730_v55, %v6173_v8  ;;  %v1012_v57 = vmax.f32 %v5732_v56, %v6175_v11  ;;  %v1008_v55 = vmax.f32 %v5724_v52, %v6143_v12 }
 0x19c   :  { %7068 = vst [vmem:[#allocation78_spill] sm:$0xff] %v6182_v14  ;;  %1760 = vmatpush.bf16.msra.mxu0 %v5209_v13  ;;  %v1003_v13 = vmax.f32 %v5707_v46, %v6102_v60  ;;  %v999_v46 = vmax.f32 %v5699_v42, %v6070_v21  ;;  %v1001_v60 = vmax.f32 %v5703_v44, %v6074_v17 }
 0x19d   :  { %v997_v42 = vmax.f32 %v5691_v40, %v6032_v39  ;;  %v1100_v21 = vmax.f32 %v1002_v29, %v1004_v59  ;;  %v1095_v44 = vmax.f32 %v993_v37, %v995_v26  ;;  %v1096_v17 = vmax.f32 %v994_v38, %v996_v34 }
 0x19e   :  { %3803 = vmatmul.msk.bf16.gmra.mxu0 %vm341_vm1, %v5155_v10  ;;  %3829 = vmatmul.msk.bf16.gmra.mxu1 %vm341_vm1, %v5155_v10  ;;  %v1099_v20 = vmax.f32 %v1001_v60, %v1003_v13  ;;  %v1203_v13 = vmax.f32 %v1151_v36, 0.0  ;;  %v1007_v26 = vmax.f32 %v5722_v51, %v6141_v18  ;;  %v1009_v56 = vmax.f32 %v5726_v53, %v6145_v27 }
 0x19f   :  { %3855 = vmatmul.msk.bf16.gmra.mxu2 %vm341_vm1, %v5155_v10  ;;  %3881 = vmatmul.msk.bf16.gmra.mxu3 %vm341_vm1, %v5155_v10  ;;  %v6213_v10 = vperm.slane %v1145_v22, 1  ;;  %v1097_v25 = vmax.f32 %v997_v42, %v999_v46  ;;  %v1153_v33 = vadd.f32 %v6211_v58, %v1095_v44  ;;  %v1010_v8 = vmax.f32 %v5728_v54, %v6147_v7  ;;  %v7069_v42 = vld [vmem:[#allocation2_spill] sm:$0xff] }
 0x1a0   :  { %v1157_v40 = vadd.f32 %v6211_v58, %v1099_v20  ;;  %v1005_v60 = vmax.f32 %v5714_v49, %v6109_v3  ;;  %v1006_v29 = vmax.f32 %v5716_v50, %v6111_v19  ;;  %v1103_v51 = vmax.f32 %v1009_v56, %v1011_v23 }
 0x1a1   :  { %v1152_v15 = vadd.f32 %v6213_v10, %v1094_v30  ;;  %v1158_v41 = vadd.f32 %v6213_v10, %v1100_v21  ;;  %v1154_v61 = vadd.f32 %v6213_v10, %v1096_v17  ;;  %v1155_v24 = vadd.f32 %v6211_v58, %v1097_v25  ;;  %v7072_v21 = vld [vmem:[#allocation4_spill] sm:$0xff]  ;;  %v7073_v17 = vld [vmem:[#allocation5_spill] sm:$0xff] }
 0x1a2   :  { %v6207_v48 = vpop.f32.mrf.mxu2  ;;  %v6209_v14 = vpop.f32.mrf.mxu3  ;;  %v1156_v22 = vadd.f32 %v6213_v10, %v1098_v45  ;;  %v1209_v32 = vmax.f32 %v1157_v40, 0.0  ;;  %v1205_v11 = vmax.f32 %v1153_v33, 0.0  ;;  %v1104_v18 = vmax.f32 %v1010_v8, %v1012_v57 }
 0x1a3   :  { %v6219_v0 = vpop.f32.mrf.mxu0  ;;  %v6221_v31 = vpop.f32.mrf.mxu1  ;;  %v1204_v59 = vmax.f32 %v1152_v15, 0.0  ;;  %v1210_v1 = vmax.f32 %v1158_v41, 0.0  ;;  %v1206_v34 = vmax.f32 %v1154_v61, 0.0  ;;  %v1207_v46 = vmax.f32 %v1155_v24, 0.0  ;;  %v7070_v20 = vld [vmem:[#allocation78_spill] sm:$0xff] }
 0x1a4   :  { %v1208_v47 = vmax.f32 %v1156_v22, 0.0  ;;  %v1015_v54 = vmax.f32 %v5751_v62, %v6207_v48  ;;  %v1016_v7 = vmax.f32 %v5753_v63, %v6209_v14  ;;  %v1101_v3 = vmax.f32 %v1005_v60, %v1007_v26  ;;  %v7071_v62 = vld [vmem:[#allocation3_spill] sm:$0xff] }
 0x1a5   :  { %v1255_v53 = vpack.c.bf16 %v1204_v59, %v1203_v13  ;;  %v1258_v12 = vpack.c.bf16 %v1210_v1, %v1209_v32  ;;  %v1102_v50 = vmax.f32 %v1006_v29, %v1008_v55  ;;  %v1256_v37 = vpack.c.bf16 %v1206_v34, %v1205_v11  ;;  %v5248_v34 = vld [vmem:[%s6986_s3 + $0x238] sm:$0xff] }
 0x1a6   :  { %v1257_v38 = vpack.c.bf16 %v1208_v47, %v1207_v46  ;;  %v1013_v43 = vmax.f32 %v7069_v42, %v6180_v9  ;;  %v1014_v48 = vmax.f32 %v7071_v62, %v7070_v20  ;;  %v1161_v63 = vadd.f32 %v6211_v58, %v1103_v51  ;;  %v5256_v46 = vld [vmem:[%s6986_s3 + $0x278] sm:$0xff] }
 0x1a7   :  { %v1162_v14 = vadd.f32 %v6213_v10, %v1104_v18  ;;  %v1017_v44 = vmax.f32 %v7072_v21, %v6219_v0  ;;  %v1350_v45 = vunpack.c.l.b16 %v1258_v12  ;;  %v1160_v9 = vadd.f32 %v6213_v10, %v1102_v50  ;;  %v5264_v29 = vld [vmem:[%s6986_s3 + $0x2b8] sm:$0xff]  ;;  %v5247_v50 = vld [vmem:[%s6986_s3 + $0x230] sm:$0xff] }
 0x1a8   :  { %v1105_v25 = vmax.f32 %v1013_v43, %v1015_v54  ;;  %v1348_v15 = vunpack.c.l.b16 %v1257_v38  ;;  %v1349_v40 = vunpack.c.h.b16 %v1257_v38  ;;  %v1484_v41 = vunpack.c.l.b16 %v1256_v37  ;;  %v5272_v51 = vld [vmem:[%s6986_s3 + $0x2f8] sm:$0xff] }
 0x1a9   :  { %v1485_v33 = vunpack.c.h.b16 %v1256_v37  ;;  %v1482_v61 = vunpack.c.l.b16 %v1255_v53  ;;  %v1483_v24 = vunpack.c.h.b16 %v1255_v53  ;;  %v1213_v0 = vmax.f32 %v1161_v63, 0.0  ;;  %v5271_v37 = vld [vmem:[%s6986_s3 + $0x2f0] sm:$0xff] }
 0x1aa   :  { %v802_v16 = vpop.f32.mrf.mxu2  ;;  %v941_v2 = vpop.f32.mrf.mxu3  ;;  %v1214_v22 = vmax.f32 %v1162_v14, 0.0  ;;  %v1163_v57 = vadd.f32 %v6211_v58, %v1105_v25  ;;  %v1352_v1 = vpack.c.b16 %v1350_v45, %v1348_v15  ;;  %v1212_v56 = vmax.f32 %v1160_v9, 0.0  ;;  %v7074_v25 = vld [vmem:[#allocation8_spill] sm:$0xff]  ;;  %v7075_v45 = vld [vmem:[#allocation9_spill] sm:$0xff]  ;;  %v5270_v9 = vld [vmem:[%s6986_s3 + $0x2e8] sm:$0xff] }
 0x1ab   :  { %v6254_v28 = vpop.f32.mrf.mxu0  ;;  %v6256_v39 = vpop.f32.mrf.mxu1  ;;  %v1019_v19 = vmax.f32 %v5765_v4, %v802_v16  ;;  %v1020_v30 = vmax.f32 %v5767_v5, %v941_v2  ;;  %v1018_v4 = vmax.f32 %v7073_v17, %v6221_v31  ;;  %v1106_v5 = vmax.f32 %v1014_v48, %v1016_v7  ;;  %v5246_v17 = vld [vmem:[%s6986_s3 + $0x228] sm:$0xff]  ;;  %v7077_v15 = vld [vmem:[#allocation13_spill] sm:$0xff] }
 0x1ac   :  { %v1351_v16 = vunpack.c.h.b16 %v1258_v12  ;;  %v1159_v2 = vadd.f32 %v6211_v58, %v1101_v3  ;;  %v1486_v47 = vpack.c.b16 %v1484_v41, %v1482_v61  ;;  %v1487_v60 = vpack.c.b16 %v1485_v33, %v1483_v24  ;;  %v7079_v24 = vld [vmem:[#allocation7_spill] sm:$0xff] }
 0x1ad   :  { %v1108_v36 = vmax.f32 %v1018_v4, %v1020_v30  ;;  %v1164_v13 = vadd.f32 %v6213_v10, %v1106_v5  ;;  %v1260_v18 = vpack.c.bf16 %v1214_v22, %v1213_v0  ;;  %v1215_v53 = vmax.f32 %v1163_v57, 0.0  ;;  %v5263_v30 = vld [vmem:[%s6986_s3 + $0x2b0] sm:$0xff]  ;;  %v5254_v4 = vld [vmem:[%s6986_s3 + $0x268] sm:$0xff]  ;;  %v7080_v22 = vld [vmem:[#allocation10_spill] sm:$0xff] }
 0x1ae   :  { %3804 = vmatmul.msk.bf16.gmra.mxu0 %vm341_vm1, %v5156_v35  ;;  %3830 = vmatmul.msk.bf16.gmra.mxu1 %vm341_vm1, %v5156_v35  ;;  %v1353_v26 = vpack.c.b16 %v1351_v16, %v1349_v40  ;;  %v1211_v55 = vmax.f32 %v1159_v2, 0.0  ;;  %v5262_v2 = vld [vmem:[%s6986_s3 + $0x2a8] sm:$0xff]  ;;  %v1022_v0 = vmax.f32 %v7079_v24, %v6256_v39 }
 0x1af   :  { %3856 = vmatmul.msk.bf16.gmra.mxu2 %vm341_vm1, %v5156_v35  ;;  %3882 = vmatmul.msk.bf16.gmra.mxu3 %vm341_vm1, %v5156_v35  ;;  %v1107_v35 = vmax.f32 %v1017_v44, %v1019_v19  ;;  %v1166_v11 = vadd.f32 %v6213_v10, %v1108_v36  ;;  %v1216_v12 = vmax.f32 %v1164_v13, 0.0  ;;  %v5255_v19 = vld [vmem:[%s6986_s3 + $0x270] sm:$0xff]  ;;  %v1651_v38 = vunpack.c.l.b16 %v1260_v18 }
 0x1b0   :  { %v1259_v54 = vpack.c.bf16 %v1212_v56, %v1211_v55  ;;  %v1652_v42 = vunpack.c.h.b16 %v1260_v18  ;;  %v7082_v55 = vld [vmem:[#allocation16_spill] sm:$0xff]  ;;  %v7085_v18 = vld [vmem:[#allocation15_spill] sm:$0xff] }
 0x1b1   :  { %v1165_v8 = vadd.f32 %v6211_v58, %v1107_v35  ;;  %v1218_v3 = vmax.f32 %v1166_v11, 0.0  ;;  %v1261_v62 = vpack.c.bf16 %v1216_v12, %v1215_v53  ;;  %v7076_v35 = vld [vmem:[#allocation12_spill] sm:$0xff]  ;;  %v7083_v11 = vld [vmem:[#allocation17_spill] sm:$0xff] }
 0x1b2   :  { %v6282_v6 = vpop.f32.mrf.mxu2  ;;  %v6284_v52 = vpop.f32.mrf.mxu3  ;;  %v1649_v14 = vunpack.c.l.b16 %v1259_v54  ;;  %v1650_v21 = vunpack.c.h.b16 %v1259_v54 }
 0x1b3   :  { %v6290_v27 = vpop.f32.mrf.mxu0  ;;  %v6292_v49 = vpop.f32.mrf.mxu1  ;;  %v1217_v7 = vmax.f32 %v1165_v8, 0.0  ;;  %v1023_v5 = vmax.f32 %v7074_v25, %v6282_v6  ;;  %v1024_v16 = vmax.f32 %v7075_v45, %v6284_v52  ;;  %v1818_v33 = vunpack.c.l.b16 %v1261_v62  ;;  %v7078_v52 = vld [vmem:[#allocation6_spill] sm:$0xff] }
 0x1b4   :  { %v1653_v6 = vpack.c.b16 %v1651_v38, %v1649_v14  ;;  %v1654_v41 = vpack.c.b16 %v1652_v42, %v1650_v21  ;;  %v1021_v61 = vmax.f32 %v7078_v52, %v6254_v28  ;;  %v1025_v57 = vmax.f32 %v7080_v22, %v6290_v27  ;;  %v5253_v28 = vld [vmem:[%s6986_s3 + $0x260] sm:$0xff]  ;;  %v7089_v38 = vld [vmem:[#allocation21_spill] sm:$0xff] }
 0x1b5   :  { %v1262_v44 = vpack.c.bf16 %v1218_v3, %v1217_v7  ;;  %v1819_v39 = vunpack.c.h.b16 %v1261_v62  ;;  %v1110_v27 = vmax.f32 %v1022_v0, %v1024_v16  ;;  %v7086_v7 = vld [vmem:[#allocation18_spill] sm:$0xff] }
 0x1b6   :  { %v1109_v8 = vmax.f32 %v1021_v61, %v1023_v5 }
 0x1b7   :  { %v1820_v13 = vunpack.c.l.b16 %v1262_v44 }
 0x1ba   :  { %v6308_v23 = vpop.f32.mrf.mxu2  ;;  %v6310_v31 = vpop.f32.mrf.mxu3 }
 0x1bb   :  { %v6314_v59 = vpop.f32.mrf.mxu0  ;;  %v6316_v32 = vpop.f32.mrf.mxu1  ;;  %v1027_v36 = vmax.f32 %v7076_v35, %v6308_v23  ;;  %v1028_v40 = vmax.f32 %v7077_v15, %v6310_v31  ;;  %v5245_v31 = vld [vmem:[%s6986_s3 + $0x220] sm:$0xff]  ;;  %v5243_v35 = vld [vmem:[%s6986_s3 + $0x210] sm:$0xff] }
 0x1bc   :  { %v1030_v53 = vmax.f32 %v7085_v18, %v6316_v32  ;;  %v5244_v32 = vld [vmem:[%s6986_s3 + $0x218] sm:$0xff] }
 0x1be   :  { %1460 = vmatmul.bf16.vlgmr.msrb.gmra.mxu0 %v1352_v1  ;;  %1474 = vmatmul.bf16.vlgmr.msrb.gmra.mxu1 %v1353_v26  ;;  %v1821_v1 = vunpack.c.h.b16 %v1262_v44  ;;  %v7081_v26 = vld [vmem:[#allocation11_spill] sm:$0xff] }
 0x1bf   :  { %1594 = vmatmul.bf16.vlgmr.msrb.gmra.mxu2 %v1486_v47  ;;  %1608 = vmatmul.bf16.vlgmr.msrb.gmra.mxu3 %v1487_v60  ;;  %v1026_v23 = vmax.f32 %v7081_v26, %v6292_v49  ;;  %v5261_v49 = vld [vmem:[%s6986_s3 + $0x2a0] sm:$0xff]  ;;  %v1111_v47 = vmax.f32 %v1025_v57, %v1027_v36  ;;  %v5251_v36 = vld [vmem:[%s6986_s3 + $0x250] sm:$0xff] }
 0x1c0   :  { %2091 = vmatpush.bf16.msrb.mxu0 %v5248_v34  ;;  %2105 = vmatpush.bf16.msrb.mxu1 %v5256_v46  ;;  %v5269_v46 = vld [vmem:[%s6986_s3 + $0x2e0] sm:$0xff]  ;;  %v1823_v14 = vpack.c.b16 %v1821_v1, %v1819_v39  ;;  %v5266_v39 = vld [vmem:[%s6986_s3 + $0x2c8] sm:$0xff] }
 0x1c1   :  { %2260 = vmatpush.bf16.msrb.mxu2 %v5264_v29  ;;  %2274 = vmatpush.bf16.msrb.mxu3 %v5272_v51  ;;  %v1112_v60 = vmax.f32 %v1026_v23, %v1028_v40  ;;  %v7084_v29 = vld [vmem:[#allocation14_spill] sm:$0xff]  ;;  %v1169_v25 = vadd.f32 %v6211_v58, %v1111_v47  ;;  %v5242_v23 = vld [vmem:[%s6986_s3 + $0x208] sm:$0xff] }
 0x1c2   :  { %v810_v43 = vpop.f32.mrf.mxu2  ;;  %v949_v20 = vpop.f32.mrf.mxu3  ;;  %v1029_v51 = vmax.f32 %v7084_v29, %v6314_v59  ;;  %v1822_v59 = vpack.c.b16 %v1820_v13, %v1818_v33  ;;  %v5257_v47 = vld [vmem:[%s6986_s3 + $0x280] sm:$0xff] }
 0x1c3   :  { %v534_v48 = vpop.f32.mrf.mxu0  ;;  %v673_v63 = vpop.f32.mrf.mxu1  ;;  %v1031_v56 = vmax.f32 %v7082_v55, %v810_v43  ;;  %v1032_v34 = vmax.f32 %v7083_v11, %v949_v20  ;;  %v1170_v5 = vadd.f32 %v6213_v10, %v1112_v60  ;;  %v1221_v33 = vmax.f32 %v1169_v25, 0.0  ;;  %v5250_v55 = vld [vmem:[%s6986_s3 + $0x248] sm:$0xff]  ;;  %v5265_v60 = vld [vmem:[%s6986_s3 + $0x2c0] sm:$0xff] }
 0x1c4   :  { %2092 = vmatpush.bf16.msrb.mxu0 %v5247_v50  ;;  %2106 = vmatpush.bf16.msrb.mxu1 %v5255_v19  ;;  %v1033_v3 = vmax.f32 %v7086_v7, %v534_v48  ;;  %v7087_v50 = vld [vmem:[#allocation19_spill] sm:$0xff]  ;;  %v5252_v48 = vld [vmem:[%s6986_s3 + $0x258] sm:$0xff] }
 0x1c5   :  { %2261 = vmatpush.bf16.msrb.mxu2 %v5263_v30  ;;  %2275 = vmatpush.bf16.msrb.mxu3 %v5271_v37  ;;  %v1034_v19 = vmax.f32 %v7087_v50, %v673_v63  ;;  %v7088_v30 = vld [vmem:[#allocation20_spill] sm:$0xff]  ;;  %v1113_v62 = vmax.f32 %v1029_v51, %v1031_v56  ;;  %v1114_v63 = vmax.f32 %v1030_v53, %v1032_v34  ;;  %v1222_v52 = vmax.f32 %v1170_v5, 0.0  ;;  %v5241_v34 = vld [vmem:[%s6986_s3 + $0x200] sm:$0xff] }
 0x1c7   :  { %v1171_v15 = vadd.f32 %v6211_v58, %v1113_v62  ;;  %v1172_v40 = vadd.f32 %v6213_v10, %v1114_v63  ;;  %v5287_v63 = vld [vmem:[%s6986_s3 + $0x370] sm:$0xff] }
 0x1c8   :  { %2093 = vmatpush.bf16.msrb.mxu0 %v5246_v17  ;;  %2107 = vmatpush.bf16.msrb.mxu1 %v5254_v4  ;;  %v5260_v17 = vld [vmem:[%s6986_s3 + $0x298] sm:$0xff] }
 0x1c9   :  { %2262 = vmatpush.bf16.msrb.mxu2 %v5262_v2  ;;  %2276 = vmatpush.bf16.msrb.mxu3 %v5270_v9  ;;  %v5268_v4 = vld [vmem:[%s6986_s3 + $0x2d8] sm:$0xff]  ;;  %v1167_v2 = vadd.f32 %v6211_v58, %v1109_v8  ;;  %v1168_v9 = vadd.f32 %v6213_v10, %v1110_v27  ;;  %v1223_v56 = vmax.f32 %v1171_v15, 0.0  ;;  %v1264_v8 = vpack.c.bf16 %v1222_v52, %v1221_v33  ;;  %v7090_v15 = vld [vmem:[#allocation28_spill] sm:$0xff] }
 0x1ca   :  { %v812_v12 = vpop.f32.mrf.mxu2  ;;  %v951_v54 = vpop.f32.mrf.mxu3  ;;  %v7092_v33 = vld [vmem:[#allocation24_spill] sm:$0xff] }
 0x1cb   :  { %v1035_v37 = vmax.f32 %v7088_v30, %v812_v12  ;;  %v1036_v42 = vmax.f32 %v7089_v38, %v951_v54  ;;  %v6394_v43 = vpop.f32.mrf.mxu0  ;;  %v6396_v20 = vpop.f32.mrf.mxu1  ;;  %v1219_v1 = vmax.f32 %v1167_v2, 0.0  ;;  %v1220_v26 = vmax.f32 %v1168_v9, 0.0  ;;  %v5280_v12 = vld [vmem:[%s6986_s3 + $0x338] sm:$0xff] }
 0x1cc   :  { %2094 = vmatpush.bf16.msrb.mxu0 %v5245_v31  ;;  %2108 = vmatpush.bf16.msrb.mxu1 %v5253_v28  ;;  %v1224_v31 = vmax.f32 %v1172_v40, 0.0  ;;  %v5258_v28 = vld [vmem:[%s6986_s3 + $0x288] sm:$0xff]  ;;  %v1989_v29 = vunpack.c.l.b16 %v1264_v8  ;;  %v1990_v51 = vunpack.c.h.b16 %v1264_v8  ;;  %v5288_v54 = vld [vmem:[%s6986_s3 + $0x378] sm:$0xff] }
 0x1cd   :  { %v1115_v21 = vmax.f32 %v1033_v3, %v1035_v37  ;;  %v1116_v44 = vmax.f32 %v1034_v19, %v1036_v42  ;;  %2263 = vmatpush.bf16.msrb.mxu2 %v5261_v49  ;;  %2277 = vmatpush.bf16.msrb.mxu3 %v5269_v46  ;;  %v1263_v11 = vpack.c.bf16 %v1220_v26, %v1219_v1  ;;  %v5249_v49 = vld [vmem:[%s6986_s3 + $0x240] sm:$0xff]  ;;  %v5296_v30 = vld [vmem:[%s6986_s3 + $0x3b8] sm:$0xff] }
 0x1ce   :  { %1761 = vmatmul.bf16.vlgmr.msra.gmra.mxu0 %v1653_v6  ;;  %1775 = vmatmul.bf16.vlgmr.msra.gmra.mxu1 %v1654_v41  ;;  %v5259_v6 = vld [vmem:[%s6986_s3 + $0x290] sm:$0xff]  ;;  %v1265_v46 = vpack.c.bf16 %v1224_v31, %v1223_v56  ;;  %v5304_v37 = vld [vmem:[%s6986_s3 + $0x3f8] sm:$0xff]  ;;  %v7094_v1 = vld [vmem:[#allocation26_spill] sm:$0xff] }
 0x1cf   :  { %v1173_v45 = vadd.f32 %v6211_v58, %v1115_v21  ;;  %v1174_v16 = vadd.f32 %v6213_v10, %v1116_v44  ;;  %1930 = vmatmul.bf16.vlgmr.msra.gmra.mxu2 %v1822_v59  ;;  %1944 = vmatmul.bf16.vlgmr.msra.gmra.mxu3 %v1823_v14  ;;  %v5267_v41 = vld [vmem:[%s6986_s3 + $0x2d0] sm:$0xff]  ;;  %v1987_v38 = vunpack.c.l.b16 %v1263_v11  ;;  %v1988_v42 = vunpack.c.h.b16 %v1263_v11  ;;  %v5293_v11 = vld [vmem:[%s6986_s3 + $0x3a0] sm:$0xff] }
 0x1d0   :  { %2095 = vmatpush.bf16.msrb.mxu0 %v5244_v32  ;;  %2109 = vmatpush.bf16.msrb.mxu1 %v5252_v48  ;;  %v2156_v62 = vunpack.c.l.b16 %v1265_v46  ;;  %v2157_v59 = vunpack.c.h.b16 %v1265_v46  ;;  %v5279_v48 = vld [vmem:[%s6986_s3 + $0x330] sm:$0xff] }
 0x1d1   :  { %2264 = vmatpush.bf16.msrb.mxu2 %v5260_v17  ;;  %2278 = vmatpush.bf16.msrb.mxu3 %v5268_v4  ;;  %v1225_v0 = vmax.f32 %v1173_v45, 0.0  ;;  %v1226_v22 = vmax.f32 %v1174_v16, 0.0  ;;  %v1991_v14 = vpack.c.b16 %v1989_v29, %v1987_v38  ;;  %v1992_v32 = vpack.c.b16 %v1990_v51, %v1988_v42  ;;  %v5295_v17 = vld [vmem:[%s6986_s3 + $0x3b0] sm:$0xff]  ;;  %v5278_v45 = vld [vmem:[%s6986_s3 + $0x328] sm:$0xff] }
 0x1d2   :  { %v6430_v61 = vpop.f32.mrf.mxu2  ;;  %v6432_v24 = vpop.f32.mrf.mxu3  ;;  %v5303_v4 = vld [vmem:[%s6986_s3 + $0x3f0] sm:$0xff]  ;;  %v5286_v16 = vld [vmem:[%s6986_s3 + $0x368] sm:$0xff] }
 0x1d3   :  { %v6434_v57 = vpop.f32.mrf.mxu0  ;;  %v6436_v13 = vpop.f32.mrf.mxu1  ;;  %v1266_v27 = vpack.c.bf16 %v1226_v22, %v1225_v0  ;;  %v1039_v52 = vmax.f32 %v7092_v33, %v6430_v61  ;;  %v7093_v0 = vld [vmem:[#allocation25_spill] sm:$0xff]  ;;  %v7096_v56 = vld [vmem:[#allocation32_spill] sm:$0xff]  ;;  %v5285_v61 = vld [vmem:[%s6986_s3 + $0x360] sm:$0xff] }
 0x1d4   :  { %2096 = vmatpush.bf16.msrb.mxu0 %v5243_v35  ;;  %2110 = vmatpush.bf16.msrb.mxu1 %v5251_v36  ;;  %v5294_v35 = vld [vmem:[%s6986_s3 + $0x3a8] sm:$0xff]  ;;  %v1040_v22 = vmax.f32 %v7093_v0, %v6432_v24  ;;  %v1041_v26 = vmax.f32 %v7094_v1, %v6434_v57  ;;  %v7097_v24 = vld [vmem:[#allocation22_spill] sm:$0xff] }
 0x1d5   :  { %2265 = vmatpush.bf16.msrb.mxu2 %v5259_v6  ;;  %2279 = vmatpush.bf16.msrb.mxu3 %v5267_v41  ;;  %v2158_v7 = vunpack.c.l.b16 %v1266_v27  ;;  %v2159_v3 = vunpack.c.h.b16 %v1266_v27  ;;  %v5302_v36 = vld [vmem:[%s6986_s3 + $0x3e8] sm:$0xff]  ;;  %v7091_v6 = vld [vmem:[#allocation29_spill] sm:$0xff] }
 0x1d6   :  { %v7098_v57 = vld [vmem:[#allocation23_spill] sm:$0xff]  ;;  %v7099_v27 = vld [vmem:[#allocation33_spill] sm:$0xff] }
 0x1d7   :  { %v2160_v21 = vpack.c.b16 %v2158_v7, %v2156_v62  ;;  %v2161_v44 = vpack.c.b16 %v2159_v3, %v2157_v59  ;;  %v1038_v8 = vmax.f32 %v7098_v57, %v6396_v20  ;;  %v7101_v20 = vld [vmem:[#allocation31_spill] sm:$0xff]  ;;  %v7105_v62 = vld [vmem:[#allocation37_spill] sm:$0xff] }
 0x1d8   :  { %2097 = vmatpush.bf16.msrb.mxu0 %v5242_v23  ;;  %2111 = vmatpush.bf16.msrb.mxu1 %v5250_v55  ;;  %v7095_v23 = vld [vmem:[#allocation27_spill] sm:$0xff] }
 0x1d9   :  { %2266 = vmatpush.bf16.msrb.mxu2 %v5258_v28  ;;  %2280 = vmatpush.bf16.msrb.mxu3 %v5266_v39  ;;  %v1042_v55 = vmax.f32 %v7095_v23, %v6436_v13  ;;  %v5277_v28 = vld [vmem:[%s6986_s3 + $0x320] sm:$0xff]  ;;  %v1037_v39 = vmax.f32 %v7097_v24, %v6394_v43  ;;  %v1118_v29 = vmax.f32 %v1038_v8, %v1040_v22  ;;  %v5274_v23 = vld [vmem:[%s6986_s3 + $0x308] sm:$0xff] }
 0x1da   :  { %v6462_v18 = vpop.f32.mrf.mxu2  ;;  %v6464_v53 = vpop.f32.mrf.mxu3  ;;  %v5290_v24 = vld [vmem:[%s6986_s3 + $0x388] sm:$0xff] }
 0x1db   :  { %v6472_v50 = vpop.f32.mrf.mxu0  ;;  %v6474_v19 = vpop.f32.mrf.mxu1  ;;  %v1043_v40 = vmax.f32 %v7090_v15, %v6462_v18  ;;  %v1044_v41 = vmax.f32 %v7091_v6, %v6464_v53  ;;  %v7102_v53 = vld [vmem:[#allocation34_spill] sm:$0xff]  ;;  %v5291_v15 = vld [vmem:[%s6986_s3 + $0x390] sm:$0xff]  ;;  %v5298_v57 = vld [vmem:[%s6986_s3 + $0x3c8] sm:$0xff] }
 0x1dc   :  { %2098 = vmatpush.bf16.msrb.mxu0 %v5241_v34  ;;  %2112 = vmatpush.bf16.msrb.mxu1 %v5249_v49  ;;  %v5301_v34 = vld [vmem:[%s6986_s3 + $0x3e0] sm:$0xff]  ;;  %v1046_v51 = vmax.f32 %v7101_v20, %v6474_v19  ;;  %v7104_v19 = vld [vmem:[#allocation36_spill] sm:$0xff] }
 0x1dd   :  { %2267 = vmatpush.bf16.msrb.mxu2 %v5257_v47  ;;  %2281 = vmatpush.bf16.msrb.mxu3 %v5265_v60  ;;  %v1119_v49 = vmax.f32 %v1041_v26, %v1043_v40  ;;  %v1120_v46 = vmax.f32 %v1042_v55, %v1044_v41  ;;  %v7100_v47 = vld [vmem:[#allocation30_spill] sm:$0xff]  ;;  %v1117_v60 = vmax.f32 %v1037_v39, %v1039_v52  ;;  %v5299_v40 = vld [vmem:[%s6986_s3 + $0x3d0] sm:$0xff]  ;;  %v5282_v55 = vld [vmem:[%s6986_s3 + $0x348] sm:$0xff] }
 0x1de   :  { %v1045_v43 = vmax.f32 %v7100_v47, %v6472_v50  ;;  %v5284_v50 = vld [vmem:[%s6986_s3 + $0x358] sm:$0xff] }
 0x1df   :  { %2099 = vmatmul.bf16.vlgmr.msrb.gmra.mxu0 %v1991_v14  ;;  %2113 = vmatmul.bf16.vlgmr.msrb.gmra.mxu1 %v1992_v32 }
 0x1e0   :  { %2429 = vmatpush.bf16.msra.mxu0 %v5280_v12  ;;  %2443 = vmatpush.bf16.msra.mxu1 %v5288_v54  ;;  %v7103_v54 = vld [vmem:[#allocation35_spill] sm:$0xff] }
 0x1e1   :  { %2598 = vmatpush.bf16.msra.mxu2 %v5296_v30  ;;  %2612 = vmatpush.bf16.msra.mxu3 %v5304_v37  ;;  %v5276_v37 = vld [vmem:[%s6986_s3 + $0x318] sm:$0xff] }
 0x1e2   :  { %2268 = vmatmul.bf16.vlgmr.msrb.gmra.mxu2 %v2160_v21  ;;  %2282 = vmatmul.bf16.vlgmr.msrb.gmra.mxu3 %v2161_v44  ;;  %v820_v25 = vpop.f32.mrf.mxu2  ;;  %v959_v5 = vpop.f32.mrf.mxu3  ;;  %v1177_v21 = vadd.f32 %v6211_v58, %v1119_v49  ;;  %v1178_v44 = vadd.f32 %v6213_v10, %v1120_v46  ;;  %v5289_v49 = vld [vmem:[%s6986_s3 + $0x380] sm:$0xff]  ;;  %v5312_v46 = vld [vmem:[%s6986_s3 + $0x438] sm:$0xff] }
 0x1e3   :  { %v544_v2 = vpop.f32.mrf.mxu0  ;;  %v683_v9 = vpop.f32.mrf.mxu1  ;;  %v1047_v31 = vmax.f32 %v7096_v56, %v820_v25  ;;  %v1048_v13 = vmax.f32 %v7099_v27, %v959_v5  ;;  %v1175_v25 = vadd.f32 %v6211_v58, %v1117_v60  ;;  %v1176_v5 = vadd.f32 %v6213_v10, %v1118_v29  ;;  %v5297_v60 = vld [vmem:[%s6986_s3 + $0x3c0] sm:$0xff]  ;;  %v5320_v29 = vld [vmem:[%s6986_s3 + $0x478] sm:$0xff] }
 0x1e4   :  { %2430 = vmatpush.bf16.msra.mxu0 %v5279_v48  ;;  %2444 = vmatpush.bf16.msra.mxu1 %v5287_v63  ;;  %v1049_v12 = vmax.f32 %v7102_v53, %v544_v2  ;;  %v1050_v7 = vmax.f32 %v7103_v54, %v683_v9  ;;  %v5292_v48 = vld [vmem:[%s6986_s3 + $0x398] sm:$0xff]  ;;  %v5283_v2 = vld [vmem:[%s6986_s3 + $0x350] sm:$0xff]  ;;  %v1229_v6 = vmax.f32 %v1177_v21, 0.0  ;;  %v1230_v41 = vmax.f32 %v1178_v44, 0.0 }
 0x1e5   :  { %2599 = vmatpush.bf16.msra.mxu2 %v5295_v17  ;;  %2613 = vmatpush.bf16.msra.mxu3 %v5303_v4  ;;  %v1121_v18 = vmax.f32 %v1045_v43, %v1047_v31  ;;  %v1122_v38 = vmax.f32 %v1046_v51, %v1048_v13  ;;  %v5300_v63 = vld [vmem:[%s6986_s3 + $0x3d8] sm:$0xff]  ;;  %v1227_v0 = vmax.f32 %v1175_v25, 0.0  ;;  %v1228_v22 = vmax.f32 %v1176_v5, 0.0  ;;  %v5273_v13 = vld [vmem:[%s6986_s3 + $0x300] sm:$0xff]  ;;  %v5327_v21 = vld [vmem:[%s6986_s3 + $0x4b0] sm:$0xff] }
 0x1e6   :  { %v1268_v39 = vpack.c.bf16 %v1230_v41, %v1229_v6  ;;  %v5336_v53 = vld [vmem:[%s6986_s3 + $0x4f8] sm:$0xff]  ;;  %v5335_v44 = vld [vmem:[%s6986_s3 + $0x4f0] sm:$0xff] }
 0x1e7   :  { %v1180_v9 = vadd.f32 %v6213_v10, %v1122_v38  ;;  %v1267_v27 = vpack.c.bf16 %v1228_v22, %v1227_v0  ;;  %v7106_v25 = vld [vmem:[#allocation44_spill] sm:$0xff]  ;;  %v7110_v6 = vld [vmem:[#allocation41_spill] sm:$0xff]  ;;  %v7111_v0 = vld [vmem:[#allocation42_spill] sm:$0xff] }
 0x1e8   :  { %2431 = vmatpush.bf16.msra.mxu0 %v5278_v45  ;;  %2445 = vmatpush.bf16.msra.mxu1 %v5286_v16  ;;  %v1179_v45 = vadd.f32 %v6211_v58, %v1121_v18  ;;  %v5275_v16 = vld [vmem:[%s6986_s3 + $0x310] sm:$0xff]  ;;  %v2327_v47 = vunpack.c.l.b16 %v1268_v39  ;;  %v2328_v43 = vunpack.c.h.b16 %v1268_v39  ;;  %v5328_v18 = vld [vmem:[%s6986_s3 + $0x4b8] sm:$0xff] }
 0x1e9   :  { %2600 = vmatpush.bf16.msra.mxu2 %v5294_v35  ;;  %2614 = vmatpush.bf16.msra.mxu3 %v5302_v36  ;;  %v1232_v31 = vmax.f32 %v1180_v9, 0.0  ;;  %v2326_v54 = vunpack.c.h.b16 %v1267_v27  ;;  %v5334_v9 = vld [vmem:[%s6986_s3 + $0x4e8] sm:$0xff] }
 0x1ea   :  { %v822_v3 = vpop.f32.mrf.mxu2  ;;  %v961_v30 = vpop.f32.mrf.mxu3  ;;  %v1231_v56 = vmax.f32 %v1179_v45, 0.0  ;;  %v7107_v45 = vld [vmem:[#allocation45_spill] sm:$0xff] }
 0x1eb   :  { %v1051_v42 = vmax.f32 %v7104_v19, %v822_v3  ;;  %v1052_v59 = vmax.f32 %v7105_v62, %v961_v30  ;;  %v6550_v14 = vpop.f32.mrf.mxu0  ;;  %v6552_v32 = vpop.f32.mrf.mxu1  ;;  %v5311_v62 = vld [vmem:[%s6986_s3 + $0x430] sm:$0xff] }
 0x1ec   :  { %2432 = vmatpush.bf16.msra.mxu0 %v5277_v28  ;;  %2446 = vmatpush.bf16.msra.mxu1 %v5285_v61 }
 0x1ed   :  { %2601 = vmatpush.bf16.msra.mxu2 %v5293_v11  ;;  %2615 = vmatpush.bf16.msra.mxu3 %v5301_v34  ;;  %v1123_v17 = vmax.f32 %v1049_v12, %v1051_v42  ;;  %v1124_v4 = vmax.f32 %v1050_v7, %v1052_v59  ;;  %v5281_v11 = vld [vmem:[%s6986_s3 + $0x340] sm:$0xff]  ;;  %v1269_v34 = vpack.c.bf16 %v1232_v31, %v1231_v56  ;;  %v2325_v12 = vunpack.c.l.b16 %v1267_v27  ;;  %v5319_v59 = vld [vmem:[%s6986_s3 + $0x470] sm:$0xff] }
 0x1ee   :  { %v2330_v42 = vpack.c.b16 %v2328_v43, %v2326_v54  ;;  %v7113_v56 = vld [vmem:[#allocation48_spill] sm:$0xff]  ;;  %v7116_v27 = vld [vmem:[#allocation46_spill] sm:$0xff]  ;;  %v5332_v54 = vld [vmem:[%s6986_s3 + $0x4d8] sm:$0xff] }
 0x1ef   :  { %v1181_v35 = vadd.f32 %v6211_v58, %v1123_v17  ;;  %v1182_v36 = vadd.f32 %v6213_v10, %v1124_v4  ;;  %v2494_v30 = vunpack.c.l.b16 %v1269_v34  ;;  %v2329_v19 = vpack.c.b16 %v2327_v47, %v2325_v12  ;;  %v5310_v17 = vld [vmem:[%s6986_s3 + $0x428] sm:$0xff]  ;;  %v5324_v12 = vld [vmem:[%s6986_s3 + $0x498] sm:$0xff] }
 0x1f0   :  { %2433 = vmatpush.bf16.msra.mxu0 %v5276_v37  ;;  %2447 = vmatpush.bf16.msra.mxu1 %v5284_v50  ;;  %v2495_v37 = vunpack.c.h.b16 %v1269_v34  ;;  %v5318_v4 = vld [vmem:[%s6986_s3 + $0x468] sm:$0xff] }
 0x1f1   :  { %2602 = vmatpush.bf16.msra.mxu2 %v5292_v48  ;;  %2616 = vmatpush.bf16.msra.mxu3 %v5300_v63  ;;  %v1233_v33 = vmax.f32 %v1181_v35, 0.0  ;;  %v1234_v52 = vmax.f32 %v1182_v36, 0.0  ;;  %v7108_v35 = vld [vmem:[#allocation38_spill] sm:$0xff] }
 0x1f2   :  { %v6580_v1 = vpop.f32.mrf.mxu2  ;;  %v6582_v26 = vpop.f32.mrf.mxu3  ;;  %v1053_v36 = vmax.f32 %v7108_v35, %v6550_v14  ;;  %v5323_v35 = vld [vmem:[%s6986_s3 + $0x490] sm:$0xff] }
 0x1f3   :  { %v6590_v28 = vpop.f32.mrf.mxu0  ;;  %v6592_v61 = vpop.f32.mrf.mxu1  ;;  %v1270_v8 = vpack.c.bf16 %v1234_v52, %v1233_v33  ;;  %v1056_v41 = vmax.f32 %v7110_v6, %v6582_v26  ;;  %v7117_v26 = vld [vmem:[#allocation47_spill] sm:$0xff] }
 0x1f4   :  { %2434 = vmatpush.bf16.msra.mxu0 %v5275_v16  ;;  %2448 = vmatpush.bf16.msra.mxu1 %v5283_v2  ;;  %v5326_v2 = vld [vmem:[%s6986_s3 + $0x4a8] sm:$0xff]  ;;  %v1057_v22 = vmax.f32 %v7111_v0, %v6590_v28  ;;  %v5309_v28 = vld [vmem:[%s6986_s3 + $0x420] sm:$0xff] }
 0x1f5   :  { %2603 = vmatpush.bf16.msra.mxu2 %v5291_v15  ;;  %2617 = vmatpush.bf16.msra.mxu3 %v5299_v40  ;;  %v2496_v20 = vunpack.c.l.b16 %v1270_v8  ;;  %v2497_v51 = vunpack.c.h.b16 %v1270_v8  ;;  %v7109_v15 = vld [vmem:[#allocation40_spill] sm:$0xff]  ;;  %v7115_v8 = vld [vmem:[#allocation39_spill] sm:$0xff] }
 0x1f6   :  { %v1055_v40 = vmax.f32 %v7109_v15, %v6580_v1  ;;  %v1054_v1 = vmax.f32 %v7115_v8, %v6552_v32  ;;  %v5325_v32 = vld [vmem:[%s6986_s3 + $0x4a0] sm:$0xff]  ;;  %v5306_v0 = vld [vmem:[%s6986_s3 + $0x408] sm:$0xff] }
 0x1f7   :  { %v2498_v48 = vpack.c.b16 %v2496_v20, %v2494_v30  ;;  %v2499_v63 = vpack.c.b16 %v2497_v51, %v2495_v37  ;;  %v5308_v20 = vld [vmem:[%s6986_s3 + $0x418] sm:$0xff] }
 0x1f8   :  { %2435 = vmatpush.bf16.msra.mxu0 %v5274_v23  ;;  %2449 = vmatpush.bf16.msra.mxu1 %v5282_v55  ;;  %v7112_v23 = vld [vmem:[#allocation43_spill] sm:$0xff]  ;;  %v1125_v47 = vmax.f32 %v1053_v36, %v1055_v40  ;;  %v1126_v43 = vmax.f32 %v1054_v1, %v1056_v41  ;;  %v5316_v51 = vld [vmem:[%s6986_s3 + $0x458] sm:$0xff]  ;;  %v5331_v36 = vld [vmem:[%s6986_s3 + $0x4d0] sm:$0xff] }
 0x1f9   :  { %2604 = vmatpush.bf16.msra.mxu2 %v5290_v24  ;;  %2618 = vmatpush.bf16.msra.mxu3 %v5298_v57  ;;  %v1058_v55 = vmax.f32 %v7112_v23, %v6592_v61  ;;  %v7114_v24 = vld [vmem:[#allocation49_spill] sm:$0xff]  ;;  %v5317_v61 = vld [vmem:[%s6986_s3 + $0x460] sm:$0xff] }
 0x1fa   :  { %v827_v7 = vpop.f32.mrf.mxu2  ;;  %v966_v3 = vpop.f32.mrf.mxu3 }
 0x1fb   :  { %v552_v50 = vpop.f32.mrf.mxu0  ;;  %v691_v38 = vpop.f32.mrf.mxu1  ;;  %v1059_v5 = vmax.f32 %v7106_v25, %v827_v7  ;;  %v1060_v16 = vmax.f32 %v7107_v45, %v966_v3  ;;  %v1183_v7 = vadd.f32 %v6211_v58, %v1125_v47  ;;  %v1184_v3 = vadd.f32 %v6213_v10, %v1126_v43  ;;  %v5307_v25 = vld [vmem:[%s6986_s3 + $0x410] sm:$0xff] }
 0x1fc   :  { %2436 = vmatpush.bf16.msra.mxu0 %v5273_v13  ;;  %2450 = vmatpush.bf16.msra.mxu1 %v5281_v11  ;;  %v1061_v13 = vmax.f32 %v7116_v27, %v552_v50  ;;  %v1062_v11 = vmax.f32 %v7117_v26, %v691_v38  ;;  %v5305_v26 = vld [vmem:[%s6986_s3 + $0x400] sm:$0xff] }
 0x1fd   :  { %2605 = vmatpush.bf16.msra.mxu2 %v5289_v49  ;;  %2619 = vmatpush.bf16.msra.mxu3 %v5297_v60  ;;  %v1127_v34 = vmax.f32 %v1057_v22, %v1059_v5  ;;  %v1128_v49 = vmax.f32 %v1058_v55, %v1060_v16  ;;  %v5315_v5 = vld [vmem:[%s6986_s3 + $0x450] sm:$0xff]  ;;  %v1235_v6 = vmax.f32 %v1183_v7, 0.0  ;;  %v1236_v41 = vmax.f32 %v1184_v3, 0.0  ;;  %v5314_v22 = vld [vmem:[%s6986_s3 + $0x448] sm:$0xff]  ;;  %v5360_v7 = vld [vmem:[%s6986_s3 + $0x5b8] sm:$0xff] }
 0x1fe   :  { %v5368_v3 = vld [vmem:[%s6986_s3 + $0x5f8] sm:$0xff] }
 0x1ff   :  { %2437 = vmatmul.bf16.vlgmr.msra.gmra.mxu0 %v2329_v19  ;;  %2451 = vmatmul.bf16.vlgmr.msra.gmra.mxu1 %v2330_v42  ;;  %v7118_v19 = vld [vmem:[#allocation50_spill] sm:$0xff]  ;;  %v1271_v8 = vpack.c.bf16 %v1236_v41, %v1235_v6  ;;  %v5358_v6 = vld [vmem:[%s6986_s3 + $0x5a8] sm:$0xff] }
 0x200   :  { %2767 = vmatpush.bf16.msrb.mxu0 %v5312_v46  ;;  %2781 = vmatpush.bf16.msrb.mxu1 %v5320_v29  ;;  %v5333_v46 = vld [vmem:[%s6986_s3 + $0x4e0] sm:$0xff]  ;;  %v5366_v41 = vld [vmem:[%s6986_s3 + $0x5e8] sm:$0xff] }
 0x201   :  { %2936 = vmatpush.bf16.msrb.mxu2 %v5328_v18  ;;  %2950 = vmatpush.bf16.msrb.mxu3 %v5336_v53  ;;  %v1185_v18 = vadd.f32 %v6211_v58, %v1127_v34  ;;  %v1186_v53 = vadd.f32 %v6213_v10, %v1128_v49 }
 0x202   :  { %2606 = vmatmul.bf16.vlgmr.msra.gmra.mxu2 %v2498_v48  ;;  %2620 = vmatmul.bf16.vlgmr.msra.gmra.mxu3 %v2499_v63  ;;  %v830_v33 = vpop.f32.mrf.mxu2  ;;  %v969_v52 = vpop.f32.mrf.mxu3  ;;  %v7120_v48 = vld [vmem:[#allocation52_spill] sm:$0xff] }
 0x203   :  { %v1063_v31 = vmax.f32 %v7113_v56, %v830_v33  ;;  %v1064_v39 = vmax.f32 %v7114_v24, %v969_v52  ;;  %v554_v57 = vpop.f32.mrf.mxu0  ;;  %v693_v14 = vpop.f32.mrf.mxu1  ;;  %v1237_v45 = vmax.f32 %v1185_v18, 0.0  ;;  %v1238_v16 = vmax.f32 %v1186_v53, 0.0  ;;  %v5330_v24 = vld [vmem:[%s6986_s3 + $0x4c8] sm:$0xff] }
 0x204   :  { %2768 = vmatpush.bf16.msrb.mxu0 %v5311_v62  ;;  %2782 = vmatpush.bf16.msrb.mxu1 %v5319_v59  ;;  %v1065_v42 = vmax.f32 %v7118_v19, %v554_v57  ;;  %v7119_v62 = vld [vmem:[#allocation51_spill] sm:$0xff] }
 0x205   :  { %2937 = vmatpush.bf16.msrb.mxu2 %v5327_v21  ;;  %2951 = vmatpush.bf16.msrb.mxu3 %v5335_v44  ;;  %v1129_v60 = vmax.f32 %v1061_v13, %v1063_v31  ;;  %v1130_v29 = vmax.f32 %v1062_v11, %v1064_v39  ;;  %v1066_v59 = vmax.f32 %v7119_v62, %v693_v14  ;;  %v7121_v21 = vld [vmem:[#allocation53_spill] sm:$0xff]  ;;  %v5322_v31 = vld [vmem:[%s6986_s3 + $0x488] sm:$0xff]  ;;  %v5313_v11 = vld [vmem:[%s6986_s3 + $0x440] sm:$0xff] }
 0x206   :  { %v1272_v23 = vpack.c.bf16 %v1238_v16, %v1237_v45  ;;  %v5359_v62 = vld [vmem:[%s6986_s3 + $0x5b0] sm:$0xff] }
 0x207   :  { %v1187_v30 = vadd.f32 %v6211_v58, %v1129_v60  ;;  %v1188_v37 = vadd.f32 %v6213_v10, %v1130_v29  ;;  %v5344_v60 = vld [vmem:[%s6986_s3 + $0x538] sm:$0xff]  ;;  %v7124_v45 = vld [vmem:[#allocation56_spill] sm:$0xff] }
 0x208   :  { %2769 = vmatpush.bf16.msrb.mxu0 %v5310_v17  ;;  %2783 = vmatpush.bf16.msrb.mxu1 %v5318_v4  ;;  %v5352_v29 = vld [vmem:[%s6986_s3 + $0x578] sm:$0xff] }
 0x209   :  { %2938 = vmatpush.bf16.msrb.mxu2 %v5326_v2  ;;  %2952 = vmatpush.bf16.msrb.mxu3 %v5334_v9  ;;  %v1239_v15 = vmax.f32 %v1187_v30, 0.0  ;;  %v1240_v40 = vmax.f32 %v1188_v37, 0.0 }
 0x20a   :  { %v832_v50 = vpop.f32.mrf.mxu2  ;;  %v971_v38 = vpop.f32.mrf.mxu3 }
 0x20b   :  { %v1067_v63 = vmax.f32 %v7120_v48, %v832_v50  ;;  %v1068_v44 = vmax.f32 %v7121_v21, %v971_v38  ;;  %v6700_v17 = vpop.f32.mrf.mxu0  ;;  %v6702_v4 = vpop.f32.mrf.mxu1  ;;  %v1273_v39 = vpack.c.bf16 %v1240_v40, %v1239_v15  ;;  %v5343_v50 = vld [vmem:[%s6986_s3 + $0x530] sm:$0xff]  ;;  %v7123_v21 = vld [vmem:[#allocation61_spill] sm:$0xff] }
 0x20c   :  { %2770 = vmatpush.bf16.msrb.mxu0 %v5309_v28  ;;  %2784 = vmatpush.bf16.msrb.mxu1 %v5317_v61  ;;  %v2665_v28 = vunpack.c.l.b16 %v1272_v23  ;;  %v2666_v61 = vunpack.c.h.b16 %v1272_v23  ;;  %v5351_v38 = vld [vmem:[%s6986_s3 + $0x570] sm:$0xff]  ;;  %v7127_v15 = vld [vmem:[#allocation57_spill] sm:$0xff] }
 0x20d   :  { %2939 = vmatpush.bf16.msrb.mxu2 %v5325_v32  ;;  %2953 = vmatpush.bf16.msrb.mxu3 %v5333_v46  ;;  %v1131_v2 = vmax.f32 %v1065_v42, %v1067_v63  ;;  %v1132_v9 = vmax.f32 %v1066_v59, %v1068_v44  ;;  %v5321_v32 = vld [vmem:[%s6986_s3 + $0x480] sm:$0xff]  ;;  %v2832_v47 = vunpack.c.l.b16 %v1273_v39  ;;  %v2833_v43 = vunpack.c.h.b16 %v1273_v39  ;;  %v5367_v59 = vld [vmem:[%s6986_s3 + $0x5f0] sm:$0xff] }
 0x20e   :  { %v5329_v46 = vld [vmem:[%s6986_s3 + $0x4c0] sm:$0xff]  ;;  %v7122_v48 = vld [vmem:[#allocation60_spill] sm:$0xff] }
 0x20f   :  { %v1189_v33 = vadd.f32 %v6211_v58, %v1131_v2  ;;  %v1190_v52 = vadd.f32 %v6213_v10, %v1132_v9  ;;  %v7125_v2 = vld [vmem:[#allocation58_spill] sm:$0xff] }
 0x210   :  { %2771 = vmatpush.bf16.msrb.mxu0 %v5308_v20  ;;  %2785 = vmatpush.bf16.msrb.mxu1 %v5316_v51  ;;  %v2663_v20 = vunpack.c.l.b16 %v1271_v8  ;;  %v2664_v51 = vunpack.c.h.b16 %v1271_v8 }
 0x211   :  { %2940 = vmatpush.bf16.msrb.mxu2 %v5324_v12  ;;  %2954 = vmatpush.bf16.msrb.mxu3 %v5332_v54  ;;  %v1241_v55 = vmax.f32 %v1189_v33, 0.0  ;;  %v1242_v56 = vmax.f32 %v1190_v52, 0.0  ;;  %v7128_v33 = vld [vmem:[#allocation54_spill] sm:$0xff] }
 0x212   :  { %v6730_v57 = vpop.f32.mrf.mxu2  ;;  %v6732_v14 = vpop.f32.mrf.mxu3  ;;  %v2667_v12 = vpack.c.b16 %v2665_v28, %v2663_v20  ;;  %v2668_v54 = vpack.c.b16 %v2666_v61, %v2664_v51  ;;  %v1069_v52 = vmax.f32 %v7128_v33, %v6700_v17  ;;  %v7131_v17 = vld [vmem:[#allocation65_spill] sm:$0xff]  ;;  %v7133_v61 = vld [vmem:[#allocation63_spill] sm:$0xff] }
 0x213   :  { %v1274_v1 = vpack.c.bf16 %v1242_v56, %v1241_v55  ;;  %v559_v27 = vpop.f32.mrf.mxu0  ;;  %v698_v13 = vpop.f32.mrf.mxu1  ;;  %v1071_v16 = vmax.f32 %v7124_v45, %v6730_v57  ;;  %v1072_v40 = vmax.f32 %v7127_v15, %v6732_v14  ;;  %v5341_v56 = vld [vmem:[%s6986_s3 + $0x520] sm:$0xff]  ;;  %v7130_v57 = vld [vmem:[#allocation64_spill] sm:$0xff] }
 0x214   :  { %2772 = vmatpush.bf16.msrb.mxu0 %v5307_v25  ;;  %2786 = vmatpush.bf16.msrb.mxu1 %v5315_v5  ;;  %v5342_v25 = vld [vmem:[%s6986_s3 + $0x528] sm:$0xff]  ;;  %v1073_v9 = vmax.f32 %v7125_v2, %v559_v27 }
 0x215   :  { %2941 = vmatpush.bf16.msrb.mxu2 %v5323_v35  ;;  %2955 = vmatpush.bf16.msrb.mxu3 %v5331_v36  ;;  %v2834_v34 = vunpack.c.l.b16 %v1274_v1  ;;  %v2835_v49 = vunpack.c.h.b16 %v1274_v1  ;;  %v5350_v5 = vld [vmem:[%s6986_s3 + $0x568] sm:$0xff] }
 0x216   :  { %v7126_v35 = vld [vmem:[#allocation59_spill] sm:$0xff] }
 0x217   :  { %v2836_v18 = vpack.c.b16 %v2834_v34, %v2832_v47  ;;  %v2837_v53 = vpack.c.b16 %v2835_v49, %v2833_v43  ;;  %v1074_v36 = vmax.f32 %v7126_v35, %v698_v13  ;;  %v1133_v13 = vmax.f32 %v1069_v52, %v1071_v16  ;;  %v5357_v49 = vld [vmem:[%s6986_s3 + $0x5a0] sm:$0xff]  ;;  %v5340_v47 = vld [vmem:[%s6986_s3 + $0x518] sm:$0xff]  ;;  %v5355_v35 = vld [vmem:[%s6986_s3 + $0x590] sm:$0xff] }
 0x218   :  { %2773 = vmatpush.bf16.msrb.mxu0 %v5306_v0  ;;  %2787 = vmatpush.bf16.msrb.mxu1 %v5314_v22  ;;  %v5348_v43 = vld [vmem:[%s6986_s3 + $0x558] sm:$0xff] }
 0x219   :  { %2942 = vmatpush.bf16.msrb.mxu2 %v5322_v31  ;;  %2956 = vmatpush.bf16.msrb.mxu3 %v5330_v24  ;;  %v5349_v31 = vld [vmem:[%s6986_s3 + $0x560] sm:$0xff]  ;;  %v7129_v24 = vld [vmem:[#allocation55_spill] sm:$0xff]  ;;  %v1191_v20 = vadd.f32 %v6211_v58, %v1133_v13  ;;  %v5376_v13 = vld [vmem:[%s6986_s3 + $0x638] sm:$0xff] }
 0x21a   :  { %v837_v30 = vpop.f32.mrf.mxu2  ;;  %v976_v37 = vpop.f32.mrf.mxu3  ;;  %v1070_v39 = vmax.f32 %v7129_v24, %v6702_v4  ;;  %v5365_v4 = vld [vmem:[%s6986_s3 + $0x5e0] sm:$0xff] }
 0x21b   :  { %v562_v19 = vpop.f32.mrf.mxu0  ;;  %v701_v42 = vpop.f32.mrf.mxu1  ;;  %v1075_v63 = vmax.f32 %v7122_v48, %v837_v30  ;;  %v1076_v44 = vmax.f32 %v7123_v21, %v976_v37  ;;  %v7135_v30 = vld [vmem:[#allocation67_spill] sm:$0xff]  ;;  %v7136_v48 = vld [vmem:[#allocation68_spill] sm:$0xff]  ;;  %v7137_v21 = vld [vmem:[#allocation69_spill] sm:$0xff]  ;;  %v1243_v45 = vmax.f32 %v1191_v20, 0.0 }
 0x21c   :  { %2774 = vmatpush.bf16.msrb.mxu0 %v5305_v26  ;;  %2788 = vmatpush.bf16.msrb.mxu1 %v5313_v11  ;;  %v1134_v26 = vmax.f32 %v1070_v39, %v1072_v40  ;;  %v7132_v11 = vld [vmem:[#allocation62_spill] sm:$0xff]  ;;  %v1078_v34 = vmax.f32 %v7133_v61, %v701_v42  ;;  %v5347_v42 = vld [vmem:[%s6986_s3 + $0x550] sm:$0xff]  ;;  %v5338_v40 = vld [vmem:[%s6986_s3 + $0x508] sm:$0xff] }
 0x21d   :  { %2943 = vmatpush.bf16.msrb.mxu2 %v5321_v32  ;;  %2957 = vmatpush.bf16.msrb.mxu3 %v5329_v46  ;;  %v1135_v0 = vmax.f32 %v1073_v9, %v1075_v63  ;;  %v1136_v22 = vmax.f32 %v1074_v36, %v1076_v44  ;;  %v1077_v28 = vmax.f32 %v7132_v11, %v562_v19  ;;  %v5339_v19 = vld [vmem:[%s6986_s3 + $0x510] sm:$0xff] }
 0x21e   :  { %v1192_v51 = vadd.f32 %v6213_v10, %v1134_v26  ;;  %v5363_v36 = vld [vmem:[%s6986_s3 + $0x5d0] sm:$0xff] }
 0x21f   :  { %2775 = vmatmul.bf16.vlgmr.msrb.gmra.mxu0 %v2667_v12  ;;  %2789 = vmatmul.bf16.vlgmr.msrb.gmra.mxu1 %v2668_v54  ;;  %v1193_v32 = vadd.f32 %v6211_v58, %v1135_v0  ;;  %v1194_v46 = vadd.f32 %v6213_v10, %v1136_v22  ;;  %v5375_v20 = vld [vmem:[%s6986_s3 + $0x630] sm:$0xff] }
 0x220   :  { %3105 = vmatpush.bf16.msra.mxu0 %v5344_v60  ;;  %3119 = vmatpush.bf16.msra.mxu1 %v5352_v29  ;;  %v1244_v16 = vmax.f32 %v1192_v51, 0.0  ;;  %v5383_v51 = vld [vmem:[%s6986_s3 + $0x670] sm:$0xff] }
 0x221   :  { %2944 = vmatmul.bf16.vlgmr.msrb.gmra.mxu2 %v2836_v18  ;;  %2958 = vmatmul.bf16.vlgmr.msrb.gmra.mxu3 %v2837_v53  ;;  %v5356_v18 = vld [vmem:[%s6986_s3 + $0x598] sm:$0xff]  ;;  %v1245_v12 = vmax.f32 %v1193_v32, 0.0  ;;  %v1246_v54 = vmax.f32 %v1194_v46, 0.0  ;;  %v5353_v32 = vld [vmem:[%s6986_s3 + $0x580] sm:$0xff] }
 0x222   :  { %3274 = vmatpush.bf16.msra.mxu2 %v5360_v7  ;;  %3288 = vmatpush.bf16.msra.mxu3 %v5368_v3  ;;  %v840_v23 = vpop.f32.mrf.mxu2  ;;  %v979_v55 = vpop.f32.mrf.mxu3  ;;  %v5364_v53 = vld [vmem:[%s6986_s3 + $0x5d8] sm:$0xff]  ;;  %v7134_v7 = vld [vmem:[#allocation66_spill] sm:$0xff]  ;;  %v1275_v22 = vpack.c.bf16 %v1244_v16, %v1243_v45  ;;  %v7143_v16 = vld [vmem:[#allocation75_spill] sm:$0xff] }
 0x223   :  { %v1079_v14 = vmax.f32 %v7130_v57, %v840_v23  ;;  %v1080_v8 = vmax.f32 %v7131_v17, %v979_v55  ;;  %v564_v1 = vpop.f32.mrf.mxu0  ;;  %v703_v27 = vpop.f32.mrf.mxu1  ;;  %v1276_v15 = vpack.c.bf16 %v1246_v54, %v1245_v12  ;;  %v5337_v57 = vld [vmem:[%s6986_s3 + $0x500] sm:$0xff] }
 0x224   :  { %3106 = vmatpush.bf16.msra.mxu0 %v5343_v50  ;;  %3120 = vmatpush.bf16.msra.mxu1 %v5351_v38  ;;  %v1081_v3 = vmax.f32 %v7134_v7, %v564_v1  ;;  %v1082_v37 = vmax.f32 %v7135_v30, %v703_v27  ;;  %v3001_v61 = vunpack.c.l.b16 %v1275_v22  ;;  %v5361_v46 = vld [vmem:[%s6986_s3 + $0x5c0] sm:$0xff]  ;;  %v5374_v7 = vld [vmem:[%s6986_s3 + $0x628] sm:$0xff] }
 0x225   :  { %v1137_v60 = vmax.f32 %v1077_v28, %v1079_v14  ;;  %v1138_v29 = vmax.f32 %v1078_v34, %v1080_v8  ;;  %v5345_v14 = vld [vmem:[%s6986_s3 + $0x540] sm:$0xff]  ;;  %v3003_v17 = vunpack.c.l.b16 %v1276_v15  ;;  %v3004_v8 = vunpack.c.h.b16 %v1276_v15  ;;  %v5384_v28 = vld [vmem:[%s6986_s3 + $0x678] sm:$0xff]  ;;  %v7145_v15 = vld [vmem:[#allocation71_spill] sm:$0xff] }
 0x226   :  { %3275 = vmatpush.bf16.msra.mxu2 %v5359_v62  ;;  %3289 = vmatpush.bf16.msra.mxu3 %v5367_v59  ;;  %v3002_v34 = vunpack.c.h.b16 %v1275_v22 }
 0x227   :  { %v1195_v62 = vadd.f32 %v6211_v58, %v1137_v60  ;;  %v1196_v59 = vadd.f32 %v6213_v10, %v1138_v29 }
 0x228   :  { %3107 = vmatpush.bf16.msra.mxu0 %v5342_v25  ;;  %3121 = vmatpush.bf16.msra.mxu1 %v5350_v5 }
 0x229   :  { %v1248_v33 = vmax.f32 %v1196_v59, 0.0  ;;  %v7140_v59 = vld [vmem:[#allocation72_spill] sm:$0xff] }
 0x22a   :  { %3276 = vmatpush.bf16.msra.mxu2 %v5358_v6  ;;  %3290 = vmatpush.bf16.msra.mxu3 %v5366_v41  ;;  %v842_v50 = vpop.f32.mrf.mxu2  ;;  %v981_v38 = vpop.f32.mrf.mxu3  ;;  %v5346_v6 = vld [vmem:[%s6986_s3 + $0x548] sm:$0xff]  ;;  %v1247_v41 = vmax.f32 %v1195_v62, 0.0 }
 0x22b   :  { %v1083_v63 = vmax.f32 %v7136_v48, %v842_v50  ;;  %v1084_v44 = vmax.f32 %v7137_v21, %v981_v38  ;;  %v6838_v25 = vpop.f32.mrf.mxu0  ;;  %v6840_v5 = vpop.f32.mrf.mxu1  ;;  %v7139_v38 = vld [vmem:[#allocation77_spill] sm:$0xff] }
 0x22c   :  { %3108 = vmatpush.bf16.msra.mxu0 %v5341_v56  ;;  %3122 = vmatpush.bf16.msra.mxu1 %v5349_v31  ;;  %v5354_v56 = vld [vmem:[%s6986_s3 + $0x588] sm:$0xff]  ;;  %v1277_v1 = vpack.c.bf16 %v1248_v33, %v1247_v41  ;;  %v5381_v33 = vld [vmem:[%s6986_s3 + $0x660] sm:$0xff] }
 0x22d   :  { %v1139_v2 = vmax.f32 %v1081_v3, %v1083_v63  ;;  %v1140_v9 = vmax.f32 %v1082_v37, %v1084_v44  ;;  %v5362_v31 = vld [vmem:[%s6986_s3 + $0x5c8] sm:$0xff]  ;;  %v7138_v37 = vld [vmem:[#allocation76_spill] sm:$0xff]  ;;  %v7141_v63 = vld [vmem:[#allocation73_spill] sm:$0xff] }
 0x22e   :  { %3277 = vmatpush.bf16.msra.mxu2 %v5357_v49  ;;  %3291 = vmatpush.bf16.msra.mxu3 %v5365_v4  ;;  %v3170_v60 = vunpack.c.l.b16 %v1277_v1  ;;  %v3171_v29 = vunpack.c.h.b16 %v1277_v1  ;;  %v7142_v44 = vld [vmem:[#allocation74_spill] sm:$0xff]  ;;  %v5371_v1 = vld [vmem:[%s6986_s3 + $0x610] sm:$0xff] }
 0x22f   :  { %v1197_v52 = vadd.f32 %v6211_v58, %v1139_v2  ;;  %v1198_v0 = vadd.f32 %v6213_v10, %v1140_v9  ;;  %v5373_v9 = vld [vmem:[%s6986_s3 + $0x620] sm:$0xff] }
 0x230   :  { %3109 = vmatpush.bf16.msra.mxu0 %v5340_v47  ;;  %3123 = vmatpush.bf16.msra.mxu1 %v5348_v43  ;;  %v3005_v47 = vpack.c.b16 %v3003_v17, %v3001_v61  ;;  %v3006_v43 = vpack.c.b16 %v3004_v8, %v3002_v34 }
 0x231   :  { %v1249_v23 = vmax.f32 %v1197_v52, 0.0  ;;  %v1250_v55 = vmax.f32 %v1198_v0, 0.0 }
 0x232   :  { %3278 = vmatpush.bf16.msra.mxu2 %v5356_v18  ;;  %3292 = vmatpush.bf16.msra.mxu3 %v5364_v53  ;;  %v845_v24 = vpop.f32.mrf.mxu2  ;;  %v984_v39 = vpop.f32.mrf.mxu3 }
 0x233   :  { %v1278_v27 = vpack.c.bf16 %v1250_v55, %v1249_v23  ;;  %v569_v26 = vpop.f32.mrf.mxu0  ;;  %v708_v11 = vpop.f32.mrf.mxu1  ;;  %v1087_v48 = vmax.f32 %v7140_v59, %v845_v24  ;;  %v1088_v21 = vmax.f32 %v7141_v63, %v984_v39  ;;  %v5372_v55 = vld [vmem:[%s6986_s3 + $0x618] sm:$0xff] }
 0x234   :  { %3110 = vmatpush.bf16.msra.mxu0 %v5339_v19  ;;  %3124 = vmatpush.bf16.msra.mxu1 %v5347_v42  ;;  %v5382_v42 = vld [vmem:[%s6986_s3 + $0x668] sm:$0xff]  ;;  %v1089_v45 = vmax.f32 %v7142_v44, %v569_v26  ;;  %v1090_v2 = vmax.f32 %v7143_v16, %v708_v11  ;;  %v5380_v39 = vld [vmem:[%s6986_s3 + $0x658] sm:$0xff]  ;;  %v5379_v26 = vld [vmem:[%s6986_s3 + $0x650] sm:$0xff] }
 0x235   :  { %v3172_v49 = vunpack.c.l.b16 %v1278_v27  ;;  %v3173_v4 = vunpack.c.h.b16 %v1278_v27 }
 0x236   :  { %3279 = vmatpush.bf16.msra.mxu2 %v5355_v35  ;;  %3293 = vmatpush.bf16.msra.mxu3 %v5363_v36  ;;  %v7144_v35 = vld [vmem:[#allocation70_spill] sm:$0xff] }
 0x237   :  { %v3174_v18 = vpack.c.b16 %v3172_v49, %v3170_v60  ;;  %v3175_v53 = vpack.c.b16 %v3173_v4, %v3171_v29  ;;  %v1085_v36 = vmax.f32 %v7144_v35, %v6838_v25  ;;  %v5378_v49 = vld [vmem:[%s6986_s3 + $0x648] sm:$0xff]  ;;  %v5377_v60 = vld [vmem:[%s6986_s3 + $0x640] sm:$0xff] }
 0x238   :  { %3111 = vmatpush.bf16.msra.mxu0 %v5338_v40  ;;  %3125 = vmatpush.bf16.msra.mxu1 %v5346_v6  ;;  %v1086_v40 = vmax.f32 %v7145_v15, %v6840_v5 }
 0x239   :  { %v1141_v52 = vmax.f32 %v1085_v36, %v1087_v48 }
 0x23a   :  { %3280 = vmatpush.bf16.msra.mxu2 %v5354_v56  ;;  %3294 = vmatpush.bf16.msra.mxu3 %v5362_v31  ;;  %v847_v12 = vpop.f32.mrf.mxu2  ;;  %v986_v54 = vpop.f32.mrf.mxu3  ;;  %v1142_v0 = vmax.f32 %v1086_v40, %v1088_v21  ;;  %v5391_v40 = vld [vmem:[%s6990_s5 + $0x30] sm:$0xff] }
 0x23b   :  { %v1461_v3 = vpop.f32.mrf.mxu0  ;;  %v1475_v30 = vpop.f32.mrf.mxu1  ;;  %v1091_v50 = vmax.f32 %v7138_v37, %v847_v12  ;;  %v1092_v19 = vmax.f32 %v7139_v38, %v986_v54  ;;  %v1199_v17 = vadd.f32 %v6211_v58, %v1141_v52 }
 0x23c   :  { %3112 = vmatpush.bf16.msra.mxu0 %v5337_v57  ;;  %3126 = vmatpush.bf16.msra.mxu1 %v5345_v14  ;;  %v1476_v62 = vadd.f32 %v1475_v30, %v1461_v3  ;;  %v1200_v8 = vadd.f32 %v6213_v10, %v1142_v0 }
 0x23d   :  { %v1143_v6 = vmax.f32 %v1089_v45, %v1091_v50  ;;  %v1144_v41 = vmax.f32 %v1090_v2, %v1092_v19  ;;  %v1251_v11 = vmax.f32 %v1199_v17, 0.0  ;;  %v5392_v2 = vld [vmem:[%s6990_s5 + $0x38] sm:$0xff]  ;;  %v5385_v17 = vld [vmem:[%s6990_s5] sm:$0xff] }
 0x23e   :  { %3281 = vmatpush.bf16.msra.mxu2 %v5353_v32  ;;  %3295 = vmatpush.bf16.msra.mxu3 %v5361_v46 }
 0x23f   :  { %3113 = vmatmul.bf16.vlgmr.msra.gmra.mxu0 %v3005_v47  ;;  %3127 = vmatmul.bf16.vlgmr.msra.gmra.mxu1 %v3006_v43  ;;  %v1201_v5 = vadd.f32 %v6211_v58, %v1143_v6  ;;  %v1202_v31 = vadd.f32 %v6213_v10, %v1144_v41  ;;  %v5370_v58 = vld [vmem:[%s6986_s3 + $0x608] sm:$0xff]  ;;  %v5369_v47 = vld [vmem:[%s6986_s3 + $0x600] sm:$0xff] }
 0x240   :  { %3443 = vmatpush.bf16.msrb.mxu0 %v5376_v13  ;;  %3457 = vmatpush.bf16.msrb.mxu1 %v5384_v28  ;;  %v1252_v28 = vmax.f32 %v1200_v8, 0.0  ;;  %v5390_v6 = vld [vmem:[%s6990_s5 + $0x28] sm:$0xff] }
 0x241   :  { %3282 = vmatmul.bf16.vlgmr.msra.gmra.mxu2 %v3174_v18  ;;  %3296 = vmatmul.bf16.vlgmr.msra.gmra.mxu3 %v3175_v53  ;;  %v1253_v27 = vmax.f32 %v1201_v5, 0.0  ;;  %v1254_v13 = vmax.f32 %v1202_v31, 0.0  ;;  %v5387_v31 = vld [vmem:[%s6990_s5 + $0x10] sm:$0xff] }
 0x242   :  { %v1595_v22 = vpop.f32.mrf.mxu2  ;;  %v1609_v24 = vpop.f32.mrf.mxu3  ;;  %v1279_v32 = vpack.c.bf16 %v1252_v28, %v1251_v11  ;;  %3550 = vmatpush.bf16.msrb.mxu2 %v5392_v2 }
 0x243   :  { %v1596_v23 = vadd.f32 %v1595_v22, %v1476_v62  ;;  %v1463_v25 = vpop.f32.mrf.mxu0  ;;  %v1477_v56 = vpop.f32.mrf.mxu1  ;;  %v1280_v34 = vpack.c.bf16 %v1254_v13, %v1253_v27  ;;  %v5389_v22 = vld [vmem:[%s6990_s5 + $0x20] sm:$0xff] }
 0x244   :  { %3444 = vmatpush.bf16.msrb.mxu0 %v5375_v20  ;;  %3458 = vmatpush.bf16.msrb.mxu1 %v5383_v51  ;;  %v6916_v57 = vadd.f32 %v1477_v56, %v1463_v25  ;;  %v3339_v20 = vunpack.c.l.b16 %v1279_v32  ;;  %v3340_v51 = vunpack.c.h.b16 %v1279_v32 }
 0x245   :  { %v1610_v14 = vadd.f32 %v1609_v24, %v1596_v23  ;;  %v3341_v43 = vunpack.c.l.b16 %v1280_v34  ;;  %v3342_v29 = vunpack.c.h.b16 %v1280_v34  ;;  %v5388_v23 = vld [vmem:[%s6990_s5 + $0x18] sm:$0xff]  ;;  %v5386_v24 = vld [vmem:[%s6990_s5 + $0x8] sm:$0xff] }
 0x246   :  { %3551 = vmatpush.bf16.msrb.mxu2 %v5391_v40 }
 0x247   :  { %v3343_v18 = vpack.c.b16 %v3341_v43, %v3339_v20  ;;  %v3344_v53 = vpack.c.b16 %v3342_v29, %v3340_v51 }
 0x248   :  { %3445 = vmatpush.bf16.msrb.mxu0 %v5374_v7  ;;  %3459 = vmatpush.bf16.msrb.mxu1 %v5382_v42 }
 0x24a   :  { %v1597_v12 = vpop.f32.mrf.mxu2  ;;  %v1611_v54 = vpop.f32.mrf.mxu3  ;;  %3552 = vmatpush.bf16.msrb.mxu2 %v5390_v6 }
 0x24b   :  { %v1762_v10 = vpop.f32.mrf.mxu0  ;;  %v1776_v61 = vpop.f32.mrf.mxu1  ;;  %v1598_v27 = vadd.f32 %v1597_v12, %v6916_v57 }
 0x24c   :  { %3446 = vmatpush.bf16.msrb.mxu0 %v5373_v9  ;;  %3460 = vmatpush.bf16.msrb.mxu1 %v5381_v33  ;;  %v1777_v4 = vadd.f32 %v1776_v61, %v1762_v10 }
 0x24d   :  { %v1612_v28 = vadd.f32 %v1611_v54, %v1598_v27 }
 0x24e   :  { %v6932_v46 = vadd.f32 %v1777_v4, %v1610_v14  ;;  %3553 = vmatpush.bf16.msrb.mxu2 %v5389_v22 }
 0x250   :  { %3447 = vmatpush.bf16.msrb.mxu0 %v5372_v55  ;;  %3461 = vmatpush.bf16.msrb.mxu1 %v5380_v39 }
 0x252   :  { %v1931_v30 = vpop.f32.mrf.mxu2  ;;  %v1945_v37 = vpop.f32.mrf.mxu3  ;;  %3554 = vmatpush.bf16.msrb.mxu2 %v5388_v23 }
 0x253   :  { %v1764_v7 = vpop.f32.mrf.mxu0  ;;  %v1778_v3 = vpop.f32.mrf.mxu1  ;;  %v1946_v13 = vadd.f32 %v1945_v37, %v1931_v30 }
 0x254   :  { %3448 = vmatpush.bf16.msrb.mxu0 %v5371_v1  ;;  %3462 = vmatpush.bf16.msrb.mxu1 %v5379_v26  ;;  %v1779_v26 = vadd.f32 %v1778_v3, %v1764_v7 }
 0x256   :  { %3555 = vmatpush.bf16.msrb.mxu2 %v5387_v31  ;;  %v1782_v34 = vadd.f32 %v1779_v26, %v1612_v28 }
 0x258   :  { %3449 = vmatpush.bf16.msrb.mxu0 %v5370_v58  ;;  %3463 = vmatpush.bf16.msrb.mxu1 %v5378_v49  ;;  %v1950_v58 = vadd.f32 %v1946_v13, %v6932_v46 }
 0x25a   :  { %v1933_v19 = vpop.f32.mrf.mxu2  ;;  %v1947_v42 = vpop.f32.mrf.mxu3  ;;  %3556 = vmatpush.bf16.msrb.mxu2 %v5386_v24 }
 0x25b   :  { %v1948_v10 = vadd.f32 %v1947_v42, %v1933_v19 }
 0x25c   :  { %3450 = vmatpush.bf16.msrb.mxu0 %v5369_v47  ;;  %3464 = vmatpush.bf16.msrb.mxu1 %v5377_v60  ;;  %v2100_v50 = vpop.f32.mrf.mxu0  ;;  %v2114_v38 = vpop.f32.mrf.mxu1 }
 0x25d   :  { %v2115_v11 = vadd.f32 %v2114_v38, %v2100_v50  ;;  %v1951_v20 = vadd.f32 %v1948_v10, %v1782_v34 }
 0x25e   :  { %3557 = vmatpush.bf16.msrb.mxu2 %v5385_v17 }
 0x25f   :  { %3451 = vmatmul.bf16.vlgmr.msrb.gmra.mxu0 %v3343_v18  ;;  %3465 = vmatmul.bf16.vlgmr.msrb.gmra.mxu1 %v3344_v53  ;;  %v2119_v49 = vadd.f32 %v2115_v11, %v1950_v58 }
 0x264   :  { %v2102_v62 = vpop.f32.mrf.mxu0  ;;  %v2116_v59 = vpop.f32.mrf.mxu1 }
 0x265   :  { %v2269_v48 = vpop.f32.mrf.mxu2  ;;  %v2283_v63 = vpop.f32.mrf.mxu3  ;;  %v2117_v4 = vadd.f32 %v2116_v59, %v2102_v62 }
 0x266   :  { %v2284_v61 = vadd.f32 %v2283_v63, %v2269_v48 }
 0x267   :  { %v2120_v53 = vadd.f32 %v2117_v4, %v1951_v20 }
 0x268   :  { %v2288_v51 = vadd.f32 %v2284_v61, %v2119_v49 }
 0x26d   :  { %v2271_v45 = vpop.f32.mrf.mxu2  ;;  %v2285_v16 = vpop.f32.mrf.mxu3 }
 0x26e   :  { %v2286_v18 = vadd.f32 %v2285_v16, %v2271_v45 }
 0x270   :  { %v2289_v3 = vadd.f32 %v2286_v18, %v2120_v53 }
 0x27c   :  { %v2438_v21 = vpop.f32.mrf.mxu0  ;;  %v2452_v44 = vpop.f32.mrf.mxu1 }
 0x27d   :  { %v2453_v32 = vadd.f32 %v2452_v44, %v2438_v21 }
 0x27f   :  { %v2457_v12 = vadd.f32 %v2453_v32, %v2288_v51 }
 0x284   :  { %v2440_v9 = vpop.f32.mrf.mxu0  ;;  %v2454_v35 = vpop.f32.mrf.mxu1 }
 0x285   :  { %v2607_v36 = vpop.f32.mrf.mxu2  ;;  %v2621_v15 = vpop.f32.mrf.mxu3  ;;  %v2455_v7 = vadd.f32 %v2454_v35, %v2440_v9 }
 0x286   :  { %v2622_v57 = vadd.f32 %v2621_v15, %v2607_v36 }
 0x287   :  { %v2458_v50 = vadd.f32 %v2455_v7, %v2289_v3 }
 0x288   :  { %v2626_v46 = vadd.f32 %v2622_v57, %v2457_v12 }
 0x28d   :  { %v2609_v52 = vpop.f32.mrf.mxu2  ;;  %v2623_v0 = vpop.f32.mrf.mxu3 }
 0x28e   :  { %v2624_v30 = vadd.f32 %v2623_v0, %v2609_v52  ;;  %v5393_v52 = vld [vmem:[%s6988_s4] ss:$0 sm:$0xff] }
 0x290   :  { %v2627_v48 = vadd.f32 %v2624_v30, %v2458_v50 }
 0x29c   :  { %v2776_v41 = vpop.f32.mrf.mxu0  ;;  %v2790_v33 = vpop.f32.mrf.mxu1 }
 0x29d   :  { %v2791_v54 = vadd.f32 %v2790_v33, %v2776_v41 }
 0x29f   :  { %v2795_v38 = vadd.f32 %v2791_v54, %v2626_v46 }
 0x2a4   :  { %v2778_v55 = vpop.f32.mrf.mxu0  ;;  %v2792_v25 = vpop.f32.mrf.mxu1 }
 0x2a5   :  { %v2945_v56 = vpop.f32.mrf.mxu2  ;;  %v2959_v5 = vpop.f32.mrf.mxu3  ;;  %v2793_v19 = vadd.f32 %v2792_v25, %v2778_v55 }
 0x2a6   :  { %v2960_v37 = vadd.f32 %v2959_v5, %v2945_v56 }
 0x2a7   :  { %v2796_v2 = vadd.f32 %v2793_v19, %v2627_v48 }
 0x2a8   :  { %v2964_v63 = vadd.f32 %v2960_v37, %v2795_v38 }
 0x2ad   :  { %v2947_v8 = vpop.f32.mrf.mxu2  ;;  %v2961_v1 = vpop.f32.mrf.mxu3 }
 0x2ae   :  { %v2962_v21 = vadd.f32 %v2961_v1, %v2947_v8 }
 0x2b0   :  { %v2965_v15 = vadd.f32 %v2962_v21, %v2796_v2 }
 0x2bc   :  { %v3114_v39 = vpop.f32.mrf.mxu0  ;;  %v3128_v14 = vpop.f32.mrf.mxu1 }
 0x2bd   :  { %v3129_v42 = vadd.f32 %v3128_v14, %v3114_v39  ;;  %v5394_v14 = vld [vmem:[%s6989_s6] ss:$0 sm:$0xff] }
 0x2bf   :  { %v3133_v36 = vadd.f32 %v3129_v42, %v2964_v63 }
 0x2c4   :  { %v3116_v47 = vpop.f32.mrf.mxu0  ;;  %v3130_v43 = vpop.f32.mrf.mxu1 }
 0x2c5   :  { %v3283_v60 = vpop.f32.mrf.mxu2  ;;  %v3297_v29 = vpop.f32.mrf.mxu3  ;;  %v3131_v9 = vadd.f32 %v3130_v43, %v3116_v47 }
 0x2c6   :  { %v3298_v44 = vadd.f32 %v3297_v29, %v3283_v60 }
 0x2c7   :  { %v3134_v41 = vadd.f32 %v3131_v9, %v2965_v15 }
 0x2c8   :  { %v3302_v40 = vadd.f32 %v3298_v44, %v3133_v36 }
 0x2cd   :  { %v3285_v45 = vpop.f32.mrf.mxu2  ;;  %v3299_v16 = vpop.f32.mrf.mxu3 }
 0x2ce   :  { %v3300_v6 = vadd.f32 %v3299_v16, %v3285_v45 }
 0x2d0   :  { %v3303_v23 = vadd.f32 %v3300_v6, %v3134_v41 }
 0x2dc   :  { %v3452_v62 = vpop.f32.mrf.mxu0  ;;  %v3466_v59 = vpop.f32.mrf.mxu1 }
 0x2dd   :  { %v3467_v35 = vadd.f32 %v3466_v59, %v3452_v62 }
 0x2df   :  { %v3471_v33 = vadd.f32 %v3467_v35, %v3302_v40 }
 0x2e1   :  { %v3477_v25 = vadd.f32 %v5393_v52, %v3471_v33 }
 0x2e3   :  { %v3479_v31 = vmax.f32 %v3477_v25, 0.0 }
 0x2e4   :  { %v3454_v0 = vpop.f32.mrf.mxu0  ;;  %v3468_v22 = vpop.f32.mrf.mxu1 }
 0x2e5   :  { %v3469_v55 = vadd.f32 %v3468_v22, %v3454_v0 }
 0x2e7   :  { %v3472_v56 = vadd.f32 %v3469_v55, %v3303_v23 }
 0x2e9   :  { %v3478_v5 = vadd.f32 %v5393_v52, %v3472_v56 }
 0x2eb   :  { %v3480_v24 = vmax.f32 %v3478_v5, 0.0 }
 0x2ed   :  { %v3481_v39 = vpack.c.bf16 %v3480_v24, %v3479_v31 }
 0x2ef   :  { %3558 = vmatmul.bf16.vlgmr.msrb.gmra.mxu2 %v3481_v39 }
 0x372   :  { %v3559_v17 = vpop.f32.mrf.mxu2 }
 0x373   :  { %v3560_v8 = vadd.f32 %v5394_v14, %v3559_v17 }
 0x375   :  { %v3565_v1 = vsel %vm3564_vm2, %v3560_v8, -inf }
 0x376   :  { %3566 = vmax.xlane.f32.xlu0 %v3565_v1 }
 0x37a   :  { %v3561_v27 = vpop.f32.mrf.mxu2 }
 0x37b   :  { %v3562_v13 = vadd.f32 %v5394_v14, %v3561_v27 }
 0x37d   :  { %v3568_v26 = vsel %vm3564_vm2, %v3562_v13, -inf }
 0x37e   :  { %3569 = vmax.xlane.f32.xlu0 %v3568_v26 }
 0x3e9   :  { %v3567_v11 = vpop.xlane.xlu0 %3566 }
 0x3ea   :  { %v3571_v28 = vsub.f32 %v3560_v8, %v3567_v11 }
 0x3ec   :  { %v3573_v58 = vmul.f32 1.442695, %v3571_v28 }
 0x3ee   :  { %5395 = vpow2.f32 %v3573_v58 }
 0x3f1   :  { %v3570_v10 = vpop.xlane.xlu0 %3569 }
 0x3f2   :  { %v3572_v61 = vsub.f32 %v3562_v13, %v3570_v10 }
 0x3f4   :  { %v5396_v34 = vpop.eup %5395  ;;  %v3575_v49 = vmul.f32 1.442695, %v3572_v61 }
 0x3f5   :  { %v3577_v4 = vsel %vm3564_vm2, %v5396_v34, 0.0 }
 0x3f6   :  { %5397 = vpow2.f32 %v3575_v49  ;;  %3578 = vadd.xlane.f32.xlu1 %v3577_v4 }
 0x3fc   :  { %v5398_v32 = vpop.eup %5397 }
 0x3fd   :  { %v3580_v47 = vsel %vm3564_vm2, %v5398_v32, 0.0 }
 0x3fe   :  { %3581 = vadd.xlane.f32.xlu1 %v3580_v47 }
 0x469   :  { %v3579_v43 = vpop.xlane.xlu1 %3578 }
 0x46a   :  { %5399 = vlog2.f32 %v3579_v43 }
 0x470   :  { %v5400_v60 = vpop.eup %5399 }
 0x471   :  { %v3584_v29 = vmul.f32 0.6931472, %v5400_v60  ;;  %v3582_v20 = vpop.xlane.xlu1 %3581 }
 0x472   :  { %5401 = vlog2.f32 %v3582_v20 }
 0x473   :  { %v3587_v51 = vsub.f32 %v3571_v28, %v3584_v29 }
 0x475   :  { %3589 = vst.msk [vmem:[%s6991_s7] sm:$0xff] %vm3564_vm2, %v3587_v51 }
 0x478   :  { %v5402_v18 = vpop.eup %5401 }
 0x479   :  { %v3586_v57 = vmul.f32 0.6931472, %v5402_v18 }
 0x47b   :  { %v3588_v53 = vsub.f32 %v3572_v61, %v3586_v57 }
 0x47d   :  { %3590 = vst.msk [vmem:[%s6991_s7 + $0x8] sm:$0xff] %vm3564_vm2, %v3588_v53 }

</bundles_post_ra>
